<compile_context>
chip_gen: v5e
topology: v5e:2x2
jax: 0.10.0
libtpu: 0.0.40
codegen_flags: <defaults>
</compile_context>

<pallas_src>
import functools

import jax
import jax.numpy as jnp
from jax import lax
from jax.experimental import pallas as pl
from jax.experimental.pallas import tpu as pltpu


def _round_up(x, m):
    return ((x + m - 1) // m) * m


# -----------------------------------------------------------------------------
# Kernel: recurrent part of one GRU layer.
# grid = (num_batch_blocks, T // time_chunk); the time axis is sequential.
# -----------------------------------------------------------------------------
def _gru_layer_kernel(gi_ref, h0_ref, wh_ref, bhn_ref,
                      y_ref, hout_ref, h_scr, *, unroll):
    """One chunk of `tc` time steps for one batch block of one GRU layer.

    gi_ref   : (tc, Bb, 3*Hp)  precomputed input gates [r|z|n]; r/z already
                               include b_ih+b_hh, n includes b_in only
    h0_ref   : (Bb, Hp)        initial hidden state of this layer/batch block
    wh_ref   : (Hp, 3*Hp)      fused hidden->gate weights [W_hr|W_hz|W_hn]^T
    bhn_ref  : (1, Hp)         hidden bias of the n gate
    y_ref    : (tc, Bb, Hp)    outputs for this chunk
    hout_ref : (Bb, Hp)        final hidden state (written on last chunk only)
    h_scr    : (Bb, Hp) f32    recurrent state carried across time chunks
    """
    c = pl.program_id(1)

    @pl.when(c == 0)
    def _init():
        h_scr[...] = h0_ref[...].astype(jnp.float32)

    tc, _, hp = y_ref.shape
    wh = wh_ref[...]                       # storage dtype (f32 or bf16)
    mm_dtype = wh.dtype
    # Hoisted out of the step loop: JAX does not CSE broadcast_in_dim.
    bhn = jnp.broadcast_to(bhn_ref[...].astype(jnp.float32), h_scr.shape)

    def sigmoid(x):
        # One EUP op per gate (tanh) instead of exp + divide.
        return 0.5 * (jnp.tanh(0.5 * x) + 1.0)

    def step(t, h):
        gi = gi_ref[t].astype(jnp.float32)                        # (Bb, 3Hp)
        # Single fused matmul for all three hidden gates.
        gh = jnp.dot(h.astype(mm_dtype), wh,
                     preferred_element_type=jnp.float32)          # (Bb, 3Hp)
        r = sigmoid(gi[:, 0:hp] + gh[:, 0:hp])
        z = sigmoid(gi[:, hp:2 * hp] + gh[:, hp:2 * hp])
        n = jnp.tanh(gi[:, 2 * hp:3 * hp] + r * (gh[:, 2 * hp:3 * hp] + bhn))
        h_new = n + z * (h - n)            # == (1 - z) * n + z * h
        y_ref[t] = h_new.astype(y_ref.dtype)
        return h_new

    h_last = lax.fori_loop(0, tc, step, h_scr[...], unroll=unroll)
    h_scr[...] = h_last

    @pl.when(c == pl.num_programs(1) - 1)
    def _finalize():
        hout_ref[...] = h_last.astype(hout_ref.dtype)


def _gru_layer(gi, h0, wh_all, b_hn, *, time_chunk, num_batch_blocks,
               out_dtype):
    """Run the recurrent part of one GRU layer with a Pallas kernel.

    gi     : (T, B, 3*Hp) precomputed input-to-gate activations (one slab)
    h0     : (B, Hp)
    wh_all : (Hp, 3*Hp)
    b_hn   : (1, Hp)
    Returns (y, h_last) with y: (T, B, Hp), h_last: (B, Hp).
    """
    T, B, three_hp = gi.shape
    Hp = three_hp // 3
    assert T % time_chunk == 0, (T, time_chunk)
    n_chunks = T // time_chunk

    nb = num_batch_blocks
    assert B % nb == 0, (B, nb)
    Bb = B // nb
    if nb > 1:
        # (8,128) rule: a partial second-minor block dim must be sublane-aligned.
        assert Bb % 8 == 0, "batch block must be a multiple of 8 when splitting"

    unroll = max(1, min(8, time_chunk))

    gi_spec = pl.BlockSpec((time_chunk, Bb, 3 * Hp), lambda b, c: (c, b, 0))
    y_spec = pl.BlockSpec((time_chunk, Bb, Hp), lambda b, c: (c, b, 0))
    h_spec = pl.BlockSpec((Bb, Hp), lambda b, c: (b, 0))
    wh_spec = pl.BlockSpec((Hp, 3 * Hp), lambda b, c: (0, 0))
    bhn_spec = pl.BlockSpec((1, Hp), lambda b, c: (0, 0))

    grid_spec = pltpu.PrefetchScalarGridSpec(
        num_scalar_prefetch=0,
        grid=(nb, n_chunks),
        in_specs=[gi_spec, h_spec, wh_spec, bhn_spec],
        out_specs=[y_spec, h_spec],
        scratch_shapes=[pltpu.VMEM((Bb, Hp), jnp.float32)],
    )

    # Explicit VMEM budget (double-buffer everything, conservative) + headroom,
    # capped at 64 MiB so it is safe on v7x as well as v5e/v6e.
    gi_it = jnp.dtype(gi.dtype).itemsize
    out_it = jnp.dtype(out_dtype).itemsize
    wh_it = jnp.dtype(wh_all.dtype).itemsize
    chunk_bytes = time_chunk * Bb * (3 * Hp) * gi_it + time_chunk * Bb * Hp * out_it
    const_bytes = (Hp * 3 * Hp * wh_it + Bb * Hp * jnp.dtype(h0.dtype).itemsize
                   + Hp * 4 + Bb * Hp * out_it)
    scratch_bytes = Bb * Hp * 4
    need = 2 * (chunk_bytes + const_bytes) + scratch_bytes
    vmem_limit = int(min(64 * 1024 * 1024,
                         max(32 * 1024 * 1024, need * 3 // 2 + (4 << 20))))

    # Advisory cost model: fused recurrent matmul + gate transcendentals.
    flops = 2 * T * B * Hp * (3 * Hp)
    transcendentals = 3 * T * B * Hp
    bytes_accessed = (T * B * 3 * Hp * gi_it + T * B * Hp * out_it
                      + Hp * 3 * Hp * wh_it + 2 * B * Hp * out_it + Hp * 4)
    cost = pl.CostEstimate(flops=flops, transcendentals=transcendentals,
                           bytes_accessed=bytes_accessed)

    y, h_last = pl.pallas_call(
        functools.partial(_gru_layer_kernel, unroll=unroll),
        out_shape=(
            jax.ShapeDtypeStruct((T, B, Hp), out_dtype),
            jax.ShapeDtypeStruct((B, Hp), out_dtype),
        ),
        grid_spec=grid_spec,
        compiler_params=pltpu.CompilerParams(
            dimension_semantics=("parallel", "arbitrary"),
            vmem_limit_bytes=vmem_limit),
        cost_estimate=cost,
    )(gi, h0, wh_all, b_hn)
    return y, h_last


# -----------------------------------------------------------------------------
# Parameter helpers (match nn.GRU(hidden, hidden, layer_num) init / layout).
# -----------------------------------------------------------------------------
def init_raw_gru_params(key, hidden_size, layer_num, dtype=jnp.float32):
    """Raw PyTorch-layout params: w_ih/w_hh (3H, H), b_ih/b_hh (3H,)."""
    params = []
    k = 1.0 / jnp.sqrt(hidden_size)
    for _ in range(layer_num):
        key, k1, k2, k3, k4 = jax.random.split(key, 5)
        params.append({
            "w_ih": jax.random.uniform(k1, (3 * hidden_size, hidden_size),
                                       dtype, -k, k),
            "w_hh": jax.random.uniform(k2, (3 * hidden_size, hidden_size),
                                       dtype, -k, k),
            "b_ih": jax.random.uniform(k3, (3 * hidden_size,), dtype, -k, k),
            "b_hh": jax.random.uniform(k4, (3 * hidden_size,), dtype, -k, k),
        })
    return params


def prepare_params(raw_params, storage_dtype=jnp.float32):
    """Convert raw PyTorch-layout params to the kernel-friendly layout.

    Pads the hidden dim to a multiple of 128 (lane-dense tiles, aligned gate
    slices), fuses the three hidden-gate weights into one (Hp, 3Hp) matrix,
    folds the hidden r/z biases into the input bias, and optionally stores
    weights in bf16 (gate math stays f32 in the kernel).
    """
    prepared = []
    for p in raw_params:
        w_ih, w_hh, b_ih, b_hh = p["w_ih"], p["w_hh"], p["b_ih"], p["b_hh"]
        H = w_ih.shape[1]
        Hp = _round_up(H, 128)

        def pad2(a):  # (H, H) -> (Hp, Hp), zero pad
            return jnp.pad(a, ((0, Hp - a.shape[0]), (0, Hp - a.shape[1])))

        def pad1(a):  # (H,) -> (Hp,), zero pad
            return jnp.pad(a, ((0, Hp - a.shape[0]),))

        w_ih_t = jnp.concatenate(
            [pad2(w_ih[g * H:(g + 1) * H].T) for g in range(3)], axis=1)
        w_hh_t = jnp.concatenate(
            [pad2(w_hh[g * H:(g + 1) * H].T) for g in range(3)], axis=1)
        # Fold b_hh into b_ih for the r/z gates (exact identity); b_hn must stay
        # separate because it sits inside the r * (...) term.
        b_r = pad1(b_ih[0:H] + b_hh[0:H])
        b_z = pad1(b_ih[H:2 * H] + b_hh[H:2 * H])
        b_n = pad1(b_ih[2 * H:3 * H])

        prepared.append({
            "w_ih_t": w_ih_t.astype(storage_dtype),                    # (Hp, 3Hp)
            "w_hh_t": w_hh_t.astype(storage_dtype),                    # (Hp, 3Hp)
            "b_i": jnp.concatenate([b_r, b_z, b_n]).reshape(1, 3 * Hp)
                     .astype(jnp.float32),                             # (1, 3Hp)
            "b_hn": pad1(b_hh[2 * H:3 * H]).reshape(1, Hp)
                      .astype(jnp.float32),                            # (1, Hp)
        })
    return prepared


def _pick_time_chunk(T, max_chunk=64):
    tc = min(T, max_chunk)
    while T % tc != 0:
        tc -= 1
    return tc


# -----------------------------------------------------------------------------
# Forward pass (equivalent of DecoderGRU.forward(x, x_len, h)).
# -----------------------------------------------------------------------------
@functools.partial(jax.jit, static_argnames=("time_chunk", "num_batch_blocks"))
def decoder_gru_forward(x, x_len, params, h=None, *, time_chunk=None,
                        num_batch_blocks=1):
    """x: (T, B, H); x_len: (B,) accepted-but-unused (as in the PyTorch module);
    h: (num_layers, B, H) or None.  Returns (rnn_output, hidden).

    num_batch_blocks > 1 (requires B % (8*nb) == 0) splits the batch across the
    leading "parallel" grid axis -> both TensorCores on v7x.
    """
    del x_len  # nn.GRU in the reference module ignores x_len as well.
    T, B, H = x.shape
    L = len(params)
    Hp = params[0]["w_hh_t"].shape[0]
    out_dtype = x.dtype
    if time_chunk is None:
        time_chunk = _pick_time_chunk(T)

    # Pad features to the lane-aligned hidden size (padded lanes stay zero).
    if Hp != H:
        x = jnp.pad(x, ((0, 0), (0, 0), (0, Hp - H)))
    if h is None:
        h_pad = jnp.zeros((L, B, Hp), dtype=out_dtype)
    elif Hp != H:
        h_pad = jnp.pad(h, ((0, 0), (0, 0), (0, Hp - H)))
    else:
        h_pad = h

    layer_in = x
    h_lasts = []
    for layer, p in enumerate(params):
        w_dt = p["w_ih_t"].dtype
        # Hoisted input->gates GEMM: one big MXU-friendly matmul (M = T*B rows),
        # kept as a single contiguous (T, B, 3Hp) slab for the kernel.
        gi = jnp.dot(layer_in.reshape(T * B, Hp).astype(w_dt), p["w_ih_t"],
                     preferred_element_type=jnp.float32) + p["b_i"]
        gi = gi.reshape(T, B, 3 * Hp).astype(w_dt)

        y, h_last = _gru_layer(gi, h_pad[layer], p["w_hh_t"], p["b_hn"],
                               time_chunk=time_chunk,
                               num_batch_blocks=num_batch_blocks,
                               out_dtype=out_dtype)
        h_lasts.append(h_last)
        layer_in = y

    hidden = jnp.stack(h_lasts, axis=0)
    return layer_in[:, :, :H], hidden[:, :, :H]


# -----------------------------------------------------------------------------
# Pure-JAX reference (standard PyTorch GRU math from raw params).
# -----------------------------------------------------------------------------
def _gru_reference(x, raw_params, h=None):
    T, B, H = x.shape
    L = len(raw_params)
    if h is None:
        h = jnp.zeros((L, B, H), dtype=x.dtype)
    layer_in = x
    h_lasts = []
    for layer, p in enumerate(raw_params):
        w_ih, w_hh, b_ih, b_hh = p["w_ih"], p["w_hh"], p["b_ih"], p["b_hh"]
        h_t = h[layer]
        ys = []
        for t in range(T):
            gi = layer_in[t] @ w_ih.T + b_ih
            gh = h_t @ w_hh.T + b_hh
            i_r, i_z, i_n = gi[:, :H], gi[:, H:2 * H], gi[:, 2 * H:]
            h_r, h_z, h_n = gh[:, :H], gh[:, H:2 * H], gh[:, 2 * H:]
            r = jax.nn.sigmoid(i_r + h_r)
            z = jax.nn.sigmoid(i_z + h_z)
            n = jnp.tanh(i_n + r * h_n)
            h_t = (1.0 - z) * n + z * h_t
            ys.append(h_t)
        layer_in = jnp.stack(ys, axis=0)
        h_lasts.append(h_t)
    return layer_in, jnp.stack(h_lasts, axis=0)


if __name__ == "__main__":
    hidden_size = 32
    layer_num = 2
    seq_len = 8
    batch = 4

    key = jax.random.PRNGKey(0)
    key, kx = jax.random.split(key)
    x = jax.random.normal(kx, (seq_len, batch, hidden_size), jnp.float32)
    x_len = jnp.full((batch,), seq_len, jnp.int32)  # unused, as in the module

    raw_params = init_raw_gru_params(key, hidden_size, layer_num)
    ref_out, ref_hidden = _gru_reference(x, raw_params, None)

    # --- f32 storage: exact-path check (time_chunk=4 -> 2 grid steps/layer,
    # exercising the cross-chunk hidden-state carry). ---------------------------
    params_f32 = prepare_params(raw_params, storage_dtype=jnp.float32)
    rnn_output, hidden = decoder_gru_forward(x, x_len, params_f32, None,
                                             time_chunk=4)
    jax.block_until_ready((rnn_output, hidden))

    assert rnn_output.shape == (seq_len, batch, hidden_size)
    assert hidden.shape == (layer_num, batch, hidden_size)
    assert jnp.allclose(rnn_output, ref_out, atol=2e-5, rtol=2e-5)
    assert jnp.allclose(hidden, ref_hidden, atol=2e-5, rtol=2e-5)

    # --- bf16 weight/GI storage (v6e/v7x MXU path); gate math stays f32. -------
    params_bf16 = prepare_params(raw_params, storage_dtype=jnp.bfloat16)
    out_bf16, hid_bf16 = decoder_gru_forward(x, x_len, params_bf16, None,
                                             time_chunk=4)
    jax.block_until_ready((out_bf16, hid_bf16))
    assert jnp.allclose(out_bf16, ref_out, atol=5e-2, rtol=5e-2)
    assert jnp.allclose(hid_bf16, ref_hidden, atol=5e-2, rtol=5e-2)

    print("KERNEL_OK")
</pallas_src>

<mosaic_0001>
module attributes {stable_mosaic.version = 11 : i64} {
  func.func @_gru_layer_kernel(%arg0: i32, %arg1: i32, %arg2: memref<4x4x384xf32, #tpu.memory_space<vmem>>, %arg3: memref<4x128xf32, #tpu.memory_space<vmem>>, %arg4: memref<128x384xf32, #tpu.memory_space<vmem>>, %arg5: memref<1x128xf32, #tpu.memory_space<vmem>>, %arg6: memref<4x4x128xf32, #tpu.memory_space<vmem>>, %arg7: memref<4x128xf32, #tpu.memory_space<vmem>>, %arg8: memref<4x128xf32, #tpu.memory_space<vmem>>) attributes {dimension_semantics = [#tpu.dimension_semantics<parallel>, #tpu.dimension_semantics<arbitrary>], iteration_bounds = array<i64: 1, 2>, scalar_prefetch = 0 : i64, scratch_operands = 1 : i64, tpu.core_type = #tpu.core_type<tc>, window_params = [{transform_indices = @transform_0, window_bounds = array<i64: 4, 4, 384>}, {transform_indices = @transform_1, window_bounds = array<i64: 4, 128>}, {pipeline_mode = #tpu.pipeline_mode<synchronous>, transform_indices = @transform_2, window_bounds = array<i64: 128, 384>}, {pipeline_mode = #tpu.pipeline_mode<synchronous>, transform_indices = @transform_3, window_bounds = array<i64: 1, 128>}, {transform_indices = @transform_4, window_bounds = array<i64: 4, 4, 128>}, {transform_indices = @transform_5, window_bounds = array<i64: 4, 128>}]} {
    %c0_i32 = arith.constant 0 : i32
    %0 = arith.cmpi eq, %arg1, %c0_i32 : i32
    %1 = arith.extui %0 : i1 to i32
    %c0_i32_0 = arith.constant 0 : i32
    %2 = arith.cmpi ne, %1, %c0_i32_0 : i32
    scf.if %2 {
      %c0_54 = arith.constant 0 : index
      %c0_55 = arith.constant 0 : index
      %160 = vector.load %arg3[%c0_54, %c0_55] : memref<4x128xf32, #tpu.memory_space<vmem>>, vector<4x128xf32>
      %c0_56 = arith.constant 0 : index
      %c0_57 = arith.constant 0 : index
      %161 = vector.load %arg8[%c0_56, %c0_57] : memref<4x128xf32, #tpu.memory_space<vmem>>, vector<4x128xf32>
      tpu.vector_store %arg8[%c0_56, %c0_57], %160 {strides = array<i32>} : memref<4x128xf32, #tpu.memory_space<vmem>>, vector<4x128xf32>,
    } else {
    }
    %c0 = arith.constant 0 : index
    %c0_1 = arith.constant 0 : index
    %3 = vector.load %arg4[%c0, %c0_1] : memref<128x384xf32, #tpu.memory_space<vmem>>, vector<128x384xf32>
    %c0_2 = arith.constant 0 : index
    %c0_3 = arith.constant 0 : index
    %4 = vector.load %arg5[%c0_2, %c0_3] : memref<1x128xf32, #tpu.memory_space<vmem>>, vector<1x128xf32>
    %5 = vector.shape_cast %4 : vector<1x128xf32> to vector<1x128xf32>
    %6 = vector.broadcast %5 : vector<1x128xf32> to vector<4x128xf32>
    %c0_4 = arith.constant 0 : index
    %c0_5 = arith.constant 0 : index
    %7 = vector.load %arg8[%c0_4, %c0_5] : memref<4x128xf32, #tpu.memory_space<vmem>>, vector<4x128xf32>
    %c0_i32_6 = arith.constant 0 : i32
    %8 = arith.index_cast %c0_i32_6 : i32 to index
    %c0_7 = arith.constant 0 : index
    %c0_8 = arith.constant 0 : index
    %9 = vector.load %arg2[%8, %c0_7, %c0_8] : memref<4x4x384xf32, #tpu.memory_space<vmem>>, vector<1x4x384xf32>
    %10 = vector.shape_cast %9 : vector<1x4x384xf32> to vector<4x384xf32>
    %cst = arith.constant dense<0.000000e+00> : vector<4x384xf32>
    %11 = tpu.matmul %7, %3, %cst {dimension_numbers = #tpu.dot_dimension_numbers<[1], [0], [0], [1], [0, 0, 1, 1], [], []>} : vector<4x128xf32>, vector<128x384xf32>, vector<4x384xf32> -> vector<4x384xf32>
    %12 = vector.extract_strided_slice %10 {offsets = [0, 0], sizes = [4, 128], strides = [1, 1]} : vector<4x384xf32> to vector<4x128xf32>
    %13 = vector.extract_strided_slice %11 {offsets = [0, 0], sizes = [4, 128], strides = [1, 1]} : vector<4x384xf32> to vector<4x128xf32>
    %14 = arith.addf %12, %13 : vector<4x128xf32>
    %cst_9 = arith.constant 5.000000e-01 : f32
    %15 = vector.broadcast %cst_9 : f32 to vector<4x128xf32>
    %16 = arith.mulf %15, %14 : vector<4x128xf32>
    %17 = math.tanh %16 : vector<4x128xf32>
    %cst_10 = arith.constant 1.000000e+00 : f32
    %18 = vector.broadcast %cst_10 : f32 to vector<4x128xf32>
    %19 = arith.addf %17, %18 : vector<4x128xf32>
    %cst_11 = arith.constant 5.000000e-01 : f32
    %20 = vector.broadcast %cst_11 : f32 to vector<4x128xf32>
    %21 = arith.mulf %20, %19 : vector<4x128xf32>
    %22 = vector.extract_strided_slice %10 {offsets = [0, 128], sizes = [4, 128], strides = [1, 1]} : vector<4x384xf32> to vector<4x128xf32>
    %23 = vector.extract_strided_slice %11 {offsets = [0, 128], sizes = [4, 128], strides = [1, 1]} : vector<4x384xf32> to vector<4x128xf32>
    %24 = arith.addf %22, %23 : vector<4x128xf32>
    %cst_12 = arith.constant 5.000000e-01 : f32
    %25 = vector.broadcast %cst_12 : f32 to vector<4x128xf32>
    %26 = arith.mulf %25, %24 : vector<4x128xf32>
    %27 = math.tanh %26 : vector<4x128xf32>
    %cst_13 = arith.constant 1.000000e+00 : f32
    %28 = vector.broadcast %cst_13 : f32 to vector<4x128xf32>
    %29 = arith.addf %27, %28 : vector<4x128xf32>
    %cst_14 = arith.constant 5.000000e-01 : f32
    %30 = vector.broadcast %cst_14 : f32 to vector<4x128xf32>
    %31 = arith.mulf %30, %29 : vector<4x128xf32>
    %32 = vector.extract_strided_slice %10 {offsets = [0, 256], sizes = [4, 128], strides = [1, 1]} : vector<4x384xf32> to vector<4x128xf32>
    %33 = vector.extract_strided_slice %11 {offsets = [0, 256], sizes = [4, 128], strides = [1, 1]} : vector<4x384xf32> to vector<4x128xf32>
    %34 = arith.addf %33, %6 : vector<4x128xf32>
    %35 = arith.mulf %21, %34 : vector<4x128xf32>
    %36 = arith.addf %32, %35 : vector<4x128xf32>
    %37 = math.tanh %36 : vector<4x128xf32>
    %38 = arith.subf %7, %37 : vector<4x128xf32>
    %39 = arith.mulf %31, %38 : vector<4x128xf32>
    %40 = arith.addf %37, %39 : vector<4x128xf32>
    %41 = arith.index_cast %c0_i32_6 : i32 to index
    %c0_15 = arith.constant 0 : index
    %c0_16 = arith.constant 0 : index
    %42 = vector.load %arg6[%41, %c0_15, %c0_16] : memref<4x4x128xf32, #tpu.memory_space<vmem>>, vector<1x4x128xf32>
    %43 = vector.shape_cast %42 : vector<1x4x128xf32> to vector<4x128xf32>
    %44 = vector.shape_cast %40 : vector<4x128xf32> to vector<1x4x128xf32>
    tpu.vector_store %arg6[%41, %c0_15, %c0_16], %44 {strides = array<i32>} : memref<4x4x128xf32, #tpu.memory_space<vmem>>, vector<1x4x128xf32>,
    %c1_i32 = arith.constant 1 : i32
    %45 = arith.index_cast %c1_i32 : i32 to index
    %c0_17 = arith.constant 0 : index
    %c0_18 = arith.constant 0 : index
    %46 = vector.load %arg2[%45, %c0_17, %c0_18] : memref<4x4x384xf32, #tpu.memory_space<vmem>>, vector<1x4x384xf32>
    %47 = vector.shape_cast %46 : vector<1x4x384xf32> to vector<4x384xf32>
    %cst_19 = arith.constant dense<0.000000e+00> : vector<4x384xf32>
    %48 = tpu.matmul %40, %3, %cst_19 {dimension_numbers = #tpu.dot_dimension_numbers<[1], [0], [0], [1], [0, 0, 1, 1], [], []>} : vector<4x128xf32>, vector<128x384xf32>, vector<4x384xf32> -> vector<4x384xf32>
    %49 = vector.extract_strided_slice %47 {offsets = [0, 0], sizes = [4, 128], strides = [1, 1]} : vector<4x384xf32> to vector<4x128xf32>
    %50 = vector.extract_strided_slice %48 {offsets = [0, 0], sizes = [4, 128], strides = [1, 1]} : vector<4x384xf32> to vector<4x128xf32>
    %51 = arith.addf %49, %50 : vector<4x128xf32>
    %cst_20 = arith.constant 5.000000e-01 : f32
    %52 = vector.broadcast %cst_20 : f32 to vector<4x128xf32>
    %53 = arith.mulf %52, %51 : vector<4x128xf32>
    %54 = math.tanh %53 : vector<4x128xf32>
    %cst_21 = arith.constant 1.000000e+00 : f32
    %55 = vector.broadcast %cst_21 : f32 to vector<4x128xf32>
    %56 = arith.addf %54, %55 : vector<4x128xf32>
    %cst_22 = arith.constant 5.000000e-01 : f32
    %57 = vector.broadcast %cst_22 : f32 to vector<4x128xf32>
    %58 = arith.mulf %57, %56 : vector<4x128xf32>
    %59 = vector.extract_strided_slice %47 {offsets = [0, 128], sizes = [4, 128], strides = [1, 1]} : vector<4x384xf32> to vector<4x128xf32>
    %60 = vector.extract_strided_slice %48 {offsets = [0, 128], sizes = [4, 128], strides = [1, 1]} : vector<4x384xf32> to vector<4x128xf32>
    %61 = arith.addf %59, %60 : vector<4x128xf32>
    %cst_23 = arith.constant 5.000000e-01 : f32
    %62 = vector.broadcast %cst_23 : f32 to vector<4x128xf32>
    %63 = arith.mulf %62, %61 : vector<4x128xf32>
    %64 = math.tanh %63 : vector<4x128xf32>
    %cst_24 = arith.constant 1.000000e+00 : f32
    %65 = vector.broadcast %cst_24 : f32 to vector<4x128xf32>
    %66 = arith.addf %64, %65 : vector<4x128xf32>
    %cst_25 = arith.constant 5.000000e-01 : f32
    %67 = vector.broadcast %cst_25 : f32 to vector<4x128xf32>
    %68 = arith.mulf %67, %66 : vector<4x128xf32>
    %69 = vector.extract_strided_slice %47 {offsets = [0, 256], sizes = [4, 128], strides = [1, 1]} : vector<4x384xf32> to vector<4x128xf32>
    %70 = vector.extract_strided_slice %48 {offsets = [0, 256], sizes = [4, 128], strides = [1, 1]} : vector<4x384xf32> to vector<4x128xf32>
    %71 = arith.addf %70, %6 : vector<4x128xf32>
    %72 = arith.mulf %58, %71 : vector<4x128xf32>
    %73 = arith.addf %69, %72 : vector<4x128xf32>
    %74 = math.tanh %73 : vector<4x128xf32>
    %75 = arith.subf %40, %74 : vector<4x128xf32>
    %76 = arith.mulf %68, %75 : vector<4x128xf32>
    %77 = arith.addf %74, %76 : vector<4x128xf32>
    %78 = arith.index_cast %c1_i32 : i32 to index
    %c0_26 = arith.constant 0 : index
    %c0_27 = arith.constant 0 : index
    %79 = vector.load %arg6[%78, %c0_26, %c0_27] : memref<4x4x128xf32, #tpu.memory_space<vmem>>, vector<1x4x128xf32>
    %80 = vector.shape_cast %79 : vector<1x4x128xf32> to vector<4x128xf32>
    %81 = vector.shape_cast %77 : vector<4x128xf32> to vector<1x4x128xf32>
    tpu.vector_store %arg6[%78, %c0_26, %c0_27], %81 {strides = array<i32>} : memref<4x4x128xf32, #tpu.memory_space<vmem>>, vector<1x4x128xf32>,
    %c2_i32 = arith.constant 2 : i32
    %82 = arith.index_cast %c2_i32 : i32 to index
    %c0_28 = arith.constant 0 : index
    %c0_29 = arith.constant 0 : index
    %83 = vector.load %arg2[%82, %c0_28, %c0_29] : memref<4x4x384xf32, #tpu.memory_space<vmem>>, vector<1x4x384xf32>
    %84 = vector.shape_cast %83 : vector<1x4x384xf32> to vector<4x384xf32>
    %cst_30 = arith.constant dense<0.000000e+00> : vector<4x384xf32>
    %85 = tpu.matmul %77, %3, %cst_30 {dimension_numbers = #tpu.dot_dimension_numbers<[1], [0], [0], [1], [0, 0, 1, 1], [], []>} : vector<4x128xf32>, vector<128x384xf32>, vector<4x384xf32> -> vector<4x384xf32>
    %86 = vector.extract_strided_slice %84 {offsets = [0, 0], sizes = [4, 128], strides = [1, 1]} : vector<4x384xf32> to vector<4x128xf32>
    %87 = vector.extract_strided_slice %85 {offsets = [0, 0], sizes = [4, 128], strides = [1, 1]} : vector<4x384xf32> to vector<4x128xf32>
    %88 = arith.addf %86, %87 : vector<4x128xf32>
    %cst_31 = arith.constant 5.000000e-01 : f32
    %89 = vector.broadcast %cst_31 : f32 to vector<4x128xf32>
    %90 = arith.mulf %89, %88 : vector<4x128xf32>
    %91 = math.tanh %90 : vector<4x128xf32>
    %cst_32 = arith.constant 1.000000e+00 : f32
    %92 = vector.broadcast %cst_32 : f32 to vector<4x128xf32>
    %93 = arith.addf %91, %92 : vector<4x128xf32>
    %cst_33 = arith.constant 5.000000e-01 : f32
    %94 = vector.broadcast %cst_33 : f32 to vector<4x128xf32>
    %95 = arith.mulf %94, %93 : vector<4x128xf32>
    %96 = vector.extract_strided_slice %84 {offsets = [0, 128], sizes = [4, 128], strides = [1, 1]} : vector<4x384xf32> to vector<4x128xf32>
    %97 = vector.extract_strided_slice %85 {offsets = [0, 128], sizes = [4, 128], strides = [1, 1]} : vector<4x384xf32> to vector<4x128xf32>
    %98 = arith.addf %96, %97 : vector<4x128xf32>
    %cst_34 = arith.constant 5.000000e-01 : f32
    %99 = vector.broadcast %cst_34 : f32 to vector<4x128xf32>
    %100 = arith.mulf %99, %98 : vector<4x128xf32>
    %101 = math.tanh %100 : vector<4x128xf32>
    %cst_35 = arith.constant 1.000000e+00 : f32
    %102 = vector.broadcast %cst_35 : f32 to vector<4x128xf32>
    %103 = arith.addf %101, %102 : vector<4x128xf32>
    %cst_36 = arith.constant 5.000000e-01 : f32
    %104 = vector.broadcast %cst_36 : f32 to vector<4x128xf32>
    %105 = arith.mulf %104, %103 : vector<4x128xf32>
    %106 = vector.extract_strided_slice %84 {offsets = [0, 256], sizes = [4, 128], strides = [1, 1]} : vector<4x384xf32> to vector<4x128xf32>
    %107 = vector.extract_strided_slice %85 {offsets = [0, 256], sizes = [4, 128], strides = [1, 1]} : vector<4x384xf32> to vector<4x128xf32>
    %108 = arith.addf %107, %6 : vector<4x128xf32>
    %109 = arith.mulf %95, %108 : vector<4x128xf32>
    %110 = arith.addf %106, %109 : vector<4x128xf32>
    %111 = math.tanh %110 : vector<4x128xf32>
    %112 = arith.subf %77, %111 : vector<4x128xf32>
    %113 = arith.mulf %105, %112 : vector<4x128xf32>
    %114 = arith.addf %111, %113 : vector<4x128xf32>
    %115 = arith.index_cast %c2_i32 : i32 to index
    %c0_37 = arith.constant 0 : index
    %c0_38 = arith.constant 0 : index
    %116 = vector.load %arg6[%115, %c0_37, %c0_38] : memref<4x4x128xf32, #tpu.memory_space<vmem>>, vector<1x4x128xf32>
    %117 = vector.shape_cast %116 : vector<1x4x128xf32> to vector<4x128xf32>
    %118 = vector.shape_cast %114 : vector<4x128xf32> to vector<1x4x128xf32>
    tpu.vector_store %arg6[%115, %c0_37, %c0_38], %118 {strides = array<i32>} : memref<4x4x128xf32, #tpu.memory_space<vmem>>, vector<1x4x128xf32>,
    %c3_i32 = arith.constant 3 : i32
    %119 = arith.index_cast %c3_i32 : i32 to index
    %c0_39 = arith.constant 0 : index
    %c0_40 = arith.constant 0 : index
    %120 = vector.load %arg2[%119, %c0_39, %c0_40] : memref<4x4x384xf32, #tpu.memory_space<vmem>>, vector<1x4x384xf32>
    %121 = vector.shape_cast %120 : vector<1x4x384xf32> to vector<4x384xf32>
    %cst_41 = arith.constant dense<0.000000e+00> : vector<4x384xf32>
    %122 = tpu.matmul %114, %3, %cst_41 {dimension_numbers = #tpu.dot_dimension_numbers<[1], [0], [0], [1], [0, 0, 1, 1], [], []>} : vector<4x128xf32>, vector<128x384xf32>, vector<4x384xf32> -> vector<4x384xf32>
    %123 = vector.extract_strided_slice %121 {offsets = [0, 0], sizes = [4, 128], strides = [1, 1]} : vector<4x384xf32> to vector<4x128xf32>
    %124 = vector.extract_strided_slice %122 {offsets = [0, 0], sizes = [4, 128], strides = [1, 1]} : vector<4x384xf32> to vector<4x128xf32>
    %125 = arith.addf %123, %124 : vector<4x128xf32>
    %cst_42 = arith.constant 5.000000e-01 : f32
    %126 = vector.broadcast %cst_42 : f32 to vector<4x128xf32>
    %127 = arith.mulf %126, %125 : vector<4x128xf32>
    %128 = math.tanh %127 : vector<4x128xf32>
    %cst_43 = arith.constant 1.000000e+00 : f32
    %129 = vector.broadcast %cst_43 : f32 to vector<4x128xf32>
    %130 = arith.addf %128, %129 : vector<4x128xf32>
    %cst_44 = arith.constant 5.000000e-01 : f32
    %131 = vector.broadcast %cst_44 : f32 to vector<4x128xf32>
    %132 = arith.mulf %131, %130 : vector<4x128xf32>
    %133 = vector.extract_strided_slice %121 {offsets = [0, 128], sizes = [4, 128], strides = [1, 1]} : vector<4x384xf32> to vector<4x128xf32>
    %134 = vector.extract_strided_slice %122 {offsets = [0, 128], sizes = [4, 128], strides = [1, 1]} : vector<4x384xf32> to vector<4x128xf32>
    %135 = arith.addf %133, %134 : vector<4x128xf32>
    %cst_45 = arith.constant 5.000000e-01 : f32
    %136 = vector.broadcast %cst_45 : f32 to vector<4x128xf32>
    %137 = arith.mulf %136, %135 : vector<4x128xf32>
    %138 = math.tanh %137 : vector<4x128xf32>
    %cst_46 = arith.constant 1.000000e+00 : f32
    %139 = vector.broadcast %cst_46 : f32 to vector<4x128xf32>
    %140 = arith.addf %138, %139 : vector<4x128xf32>
    %cst_47 = arith.constant 5.000000e-01 : f32
    %141 = vector.broadcast %cst_47 : f32 to vector<4x128xf32>
    %142 = arith.mulf %141, %140 : vector<4x128xf32>
    %143 = vector.extract_strided_slice %121 {offsets = [0, 256], sizes = [4, 128], strides = [1, 1]} : vector<4x384xf32> to vector<4x128xf32>
    %144 = vector.extract_strided_slice %122 {offsets = [0, 256], sizes = [4, 128], strides = [1, 1]} : vector<4x384xf32> to vector<4x128xf32>
    %145 = arith.addf %144, %6 : vector<4x128xf32>
    %146 = arith.mulf %132, %145 : vector<4x128xf32>
    %147 = arith.addf %143, %146 : vector<4x128xf32>
    %148 = math.tanh %147 : vector<4x128xf32>
    %149 = arith.subf %114, %148 : vector<4x128xf32>
    %150 = arith.mulf %142, %149 : vector<4x128xf32>
    %151 = arith.addf %148, %150 : vector<4x128xf32>
    %152 = arith.index_cast %c3_i32 : i32 to index
    %c0_48 = arith.constant 0 : index
    %c0_49 = arith.constant 0 : index
    %153 = vector.load %arg6[%152, %c0_48, %c0_49] : memref<4x4x128xf32, #tpu.memory_space<vmem>>, vector<1x4x128xf32>
    %154 = vector.shape_cast %153 : vector<1x4x128xf32> to vector<4x128xf32>
    %155 = vector.shape_cast %151 : vector<4x128xf32> to vector<1x4x128xf32>
    tpu.vector_store %arg6[%152, %c0_48, %c0_49], %155 {strides = array<i32>} : memref<4x4x128xf32, #tpu.memory_space<vmem>>, vector<1x4x128xf32>,
    %c4_i32 = arith.constant 4 : i32
    %c0_50 = arith.constant 0 : index
    %c0_51 = arith.constant 0 : index
    %156 = vector.load %arg8[%c0_50, %c0_51] : memref<4x128xf32, #tpu.memory_space<vmem>>, vector<4x128xf32>
    tpu.vector_store %arg8[%c0_50, %c0_51], %151 {strides = array<i32>} : memref<4x128xf32, #tpu.memory_space<vmem>>, vector<4x128xf32>,
    %c1_i32_52 = arith.constant 1 : i32
    %157 = arith.cmpi eq, %arg1, %c1_i32_52 : i32
    %158 = arith.extui %157 : i1 to i32
    %c0_i32_53 = arith.constant 0 : i32
    %159 = arith.cmpi ne, %158, %c0_i32_53 : i32
    scf.if %159 {
      %c0_54 = arith.constant 0 : index
      %c0_55 = arith.constant 0 : index
      %160 = vector.load %arg7[%c0_54, %c0_55] : memref<4x128xf32, #tpu.memory_space<vmem>>, vector<4x128xf32>
      tpu.vector_store %arg7[%c0_54, %c0_55], %151 {strides = array<i32>} : memref<4x128xf32, #tpu.memory_space<vmem>>, vector<4x128xf32>,
    } else {
    }
    return
  }
  func.func @transform_0(%arg0: i32, %arg1: i32) -> (i32, i32, i32) {
    %c0_i32 = arith.constant 0 : i32
    %c0_i32_0 = arith.constant 0 : i32
    return %arg1, %arg0, %c0_i32 : i32, i32, i32
  }
  func.func @transform_1(%arg0: i32, %arg1: i32) -> (i32, i32) {
    %c0_i32 = arith.constant 0 : i32
    %c0_i32_0 = arith.constant 0 : i32
    return %arg0, %c0_i32 : i32, i32
  }
  func.func @transform_2(%arg0: i32, %arg1: i32) -> (i32, i32) {
    %c0_i32 = arith.constant 0 : i32
    %c0_i32_0 = arith.constant 0 : i32
    %c0_i32_1 = arith.constant 0 : i32
    return %c0_i32, %c0_i32_0 : i32, i32
  }
  func.func @transform_3(%arg0: i32, %arg1: i32) -> (i32, i32) {
    %c0_i32 = arith.constant 0 : i32
    %c0_i32_0 = arith.constant 0 : i32
    %c0_i32_1 = arith.constant 0 : i32
    return %c0_i32, %c0_i32_0 : i32, i32
  }
  func.func @transform_4(%arg0: i32, %arg1: i32) -> (i32, i32, i32) {
    %c0_i32 = arith.constant 0 : i32
    %c0_i32_0 = arith.constant 0 : i32
    return %arg1, %arg0, %c0_i32 : i32, i32, i32
  }
  func.func @transform_5(%arg0: i32, %arg1: i32) -> (i32, i32) {
    %c0_i32 = arith.constant 0 : i32
    %c0_i32_0 = arith.constant 0 : i32
    return %arg0, %c0_i32 : i32, i32
  }
}

module attributes {stable_mosaic.version = 11 : i64} {
  func.func @_gru_layer_kernel(%arg0: i32, %arg1: i32, %arg2: memref<4x4x384xf32, #tpu.memory_space<vmem>>, %arg3: memref<4x128xf32, #tpu.memory_space<vmem>>, %arg4: memref<128x384xf32, #tpu.memory_space<vmem>>, %arg5: memref<1x128xf32, #tpu.memory_space<vmem>>, %arg6: memref<4x4x128xf32, #tpu.memory_space<vmem>>, %arg7: memref<4x128xf32, #tpu.memory_space<vmem>>, %arg8: memref<4x128xf32, #tpu.memory_space<vmem>>) attributes {dimension_semantics = [#tpu.dimension_semantics<parallel>, #tpu.dimension_semantics<arbitrary>], iteration_bounds = array<i64: 1, 2>, scalar_prefetch = 0 : i64, scratch_operands = 1 : i64, tpu.core_type = #tpu.core_type<tc>, window_params = [{transform_indices = @transform_0, window_bounds = array<i64: 4, 4, 384>}, {transform_indices = @transform_1, window_bounds = array<i64: 4, 128>}, {pipeline_mode = #tpu.pipeline_mode<synchronous>, transform_indices = @transform_2, window_bounds = array<i64: 128, 384>}, {pipeline_mode = #tpu.pipeline_mode<synchronous>, transform_indices = @transform_3, window_bounds = array<i64: 1, 128>}, {transform_indices = @transform_4, window_bounds = array<i64: 4, 4, 128>}, {transform_indices = @transform_5, window_bounds = array<i64: 4, 128>}]} {
    %c0_i32 = arith.constant 0 : i32
    %0 = arith.cmpi eq, %arg1, %c0_i32 : i32
    %1 = arith.extui %0 : i1 to i32
    %c0_i32_0 = arith.constant 0 : i32
    %2 = arith.cmpi ne, %1, %c0_i32_0 : i32
    scf.if %2 {
      %c0_54 = arith.constant 0 : index
      %c0_55 = arith.constant 0 : index
      %160 = vector.load %arg3[%c0_54, %c0_55] : memref<4x128xf32, #tpu.memory_space<vmem>>, vector<4x128xf32>
      %c0_56 = arith.constant 0 : index
      %c0_57 = arith.constant 0 : index
      %161 = vector.load %arg8[%c0_56, %c0_57] : memref<4x128xf32, #tpu.memory_space<vmem>>, vector<4x128xf32>
      tpu.vector_store %arg8[%c0_56, %c0_57], %160 {strides = array<i32>} : memref<4x128xf32, #tpu.memory_space<vmem>>, vector<4x128xf32>,
    } else {
    }
    %c0 = arith.constant 0 : index
    %c0_1 = arith.constant 0 : index
    %3 = vector.load %arg4[%c0, %c0_1] : memref<128x384xf32, #tpu.memory_space<vmem>>, vector<128x384xf32>
    %c0_2 = arith.constant 0 : index
    %c0_3 = arith.constant 0 : index
    %4 = vector.load %arg5[%c0_2, %c0_3] : memref<1x128xf32, #tpu.memory_space<vmem>>, vector<1x128xf32>
    %5 = vector.shape_cast %4 : vector<1x128xf32> to vector<1x128xf32>
    %6 = vector.broadcast %5 : vector<1x128xf32> to vector<4x128xf32>
    %c0_4 = arith.constant 0 : index
    %c0_5 = arith.constant 0 : index
    %7 = vector.load %arg8[%c0_4, %c0_5] : memref<4x128xf32, #tpu.memory_space<vmem>>, vector<4x128xf32>
    %c0_i32_6 = arith.constant 0 : i32
    %8 = arith.index_cast %c0_i32_6 : i32 to index
    %c0_7 = arith.constant 0 : index
    %c0_8 = arith.constant 0 : index
    %9 = vector.load %arg2[%8, %c0_7, %c0_8] : memref<4x4x384xf32, #tpu.memory_space<vmem>>, vector<1x4x384xf32>
    %10 = vector.shape_cast %9 : vector<1x4x384xf32> to vector<4x384xf32>
    %cst = arith.constant dense<0.000000e+00> : vector<4x384xf32>
    %11 = tpu.matmul %7, %3, %cst {dimension_numbers = #tpu.dot_dimension_numbers<[1], [0], [0], [1], [0, 0, 1, 1], [], []>} : vector<4x128xf32>, vector<128x384xf32>, vector<4x384xf32> -> vector<4x384xf32>
    %12 = vector.extract_strided_slice %10 {offsets = [0, 0], sizes = [4, 128], strides = [1, 1]} : vector<4x384xf32> to vector<4x128xf32>
    %13 = vector.extract_strided_slice %11 {offsets = [0, 0], sizes = [4, 128], strides = [1, 1]} : vector<4x384xf32> to vector<4x128xf32>
    %14 = arith.addf %12, %13 : vector<4x128xf32>
    %cst_9 = arith.constant 5.000000e-01 : f32
    %15 = vector.broadcast %cst_9 : f32 to vector<4x128xf32>
    %16 = arith.mulf %15, %14 : vector<4x128xf32>
    %17 = math.tanh %16 : vector<4x128xf32>
    %cst_10 = arith.constant 1.000000e+00 : f32
    %18 = vector.broadcast %cst_10 : f32 to vector<4x128xf32>
    %19 = arith.addf %17, %18 : vector<4x128xf32>
    %cst_11 = arith.constant 5.000000e-01 : f32
    %20 = vector.broadcast %cst_11 : f32 to vector<4x128xf32>
    %21 = arith.mulf %20, %19 : vector<4x128xf32>
    %22 = vector.extract_strided_slice %10 {offsets = [0, 128], sizes = [4, 128], strides = [1, 1]} : vector<4x384xf32> to vector<4x128xf32>
    %23 = vector.extract_strided_slice %11 {offsets = [0, 128], sizes = [4, 128], strides = [1, 1]} : vector<4x384xf32> to vector<4x128xf32>
    %24 = arith.addf %22, %23 : vector<4x128xf32>
    %cst_12 = arith.constant 5.000000e-01 : f32
    %25 = vector.broadcast %cst_12 : f32 to vector<4x128xf32>
    %26 = arith.mulf %25, %24 : vector<4x128xf32>
    %27 = math.tanh %26 : vector<4x128xf32>
    %cst_13 = arith.constant 1.000000e+00 : f32
    %28 = vector.broadcast %cst_13 : f32 to vector<4x128xf32>
    %29 = arith.addf %27, %28 : vector<4x128xf32>
    %cst_14 = arith.constant 5.000000e-01 : f32
    %30 = vector.broadcast %cst_14 : f32 to vector<4x128xf32>
    %31 = arith.mulf %30, %29 : vector<4x128xf32>
    %32 = vector.extract_strided_slice %10 {offsets = [0, 256], sizes = [4, 128], strides = [1, 1]} : vector<4x384xf32> to vector<4x128xf32>
    %33 = vector.extract_strided_slice %11 {offsets = [0, 256], sizes = [4, 128], strides = [1, 1]} : vector<4x384xf32> to vector<4x128xf32>
    %34 = arith.addf %33, %6 : vector<4x128xf32>
    %35 = arith.mulf %21, %34 : vector<4x128xf32>
    %36 = arith.addf %32, %35 : vector<4x128xf32>
    %37 = math.tanh %36 : vector<4x128xf32>
    %38 = arith.subf %7, %37 : vector<4x128xf32>
    %39 = arith.mulf %31, %38 : vector<4x128xf32>
    %40 = arith.addf %37, %39 : vector<4x128xf32>
    %41 = arith.index_cast %c0_i32_6 : i32 to index
    %c0_15 = arith.constant 0 : index
    %c0_16 = arith.constant 0 : index
    %42 = vector.load %arg6[%41, %c0_15, %c0_16] : memref<4x4x128xf32, #tpu.memory_space<vmem>>, vector<1x4x128xf32>
    %43 = vector.shape_cast %42 : vector<1x4x128xf32> to vector<4x128xf32>
    %44 = vector.shape_cast %40 : vector<4x128xf32> to vector<1x4x128xf32>
    tpu.vector_store %arg6[%41, %c0_15, %c0_16], %44 {strides = array<i32>} : memref<4x4x128xf32, #tpu.memory_space<vmem>>, vector<1x4x128xf32>,
    %c1_i32 = arith.constant 1 : i32
    %45 = arith.index_cast %c1_i32 : i32 to index
    %c0_17 = arith.constant 0 : index
    %c0_18 = arith.constant 0 : index
    %46 = vector.load %arg2[%45, %c0_17, %c0_18] : memref<4x4x384xf32, #tpu.memory_space<vmem>>, vector<1x4x384xf32>
    %47 = vector.shape_cast %46 : vector<1x4x384xf32> to vector<4x384xf32>
    %cst_19 = arith.constant dense<0.000000e+00> : vector<4x384xf32>
    %48 = tpu.matmul %40, %3, %cst_19 {dimension_numbers = #tpu.dot_dimension_numbers<[1], [0], [0], [1], [0, 0, 1, 1], [], []>} : vector<4x128xf32>, vector<128x384xf32>, vector<4x384xf32> -> vector<4x384xf32>
    %49 = vector.extract_strided_slice %47 {offsets = [0, 0], sizes = [4, 128], strides = [1, 1]} : vector<4x384xf32> to vector<4x128xf32>
    %50 = vector.extract_strided_slice %48 {offsets = [0, 0], sizes = [4, 128], strides = [1, 1]} : vector<4x384xf32> to vector<4x128xf32>
    %51 = arith.addf %49, %50 : vector<4x128xf32>
    %cst_20 = arith.constant 5.000000e-01 : f32
    %52 = vector.broadcast %cst_20 : f32 to vector<4x128xf32>
    %53 = arith.mulf %52, %51 : vector<4x128xf32>
    %54 = math.tanh %53 : vector<4x128xf32>
    %cst_21 = arith.constant 1.000000e+00 : f32
    %55 = vector.broadcast %cst_21 : f32 to vector<4x128xf32>
    %56 = arith.addf %54, %55 : vector<4x128xf32>
    %cst_22 = arith.constant 5.000000e-01 : f32
    %57 = vector.broadcast %cst_22 : f32 to vector<4x128xf32>
    %58 = arith.mulf %57, %56 : vector<4x128xf32>
    %59 = vector.extract_strided_slice %47 {offsets = [0, 128], sizes = [4, 128], strides = [1, 1]} : vector<4x384xf32> to vector<4x128xf32>
    %60 = vector.extract_strided_slice %48 {offsets = [0, 128], sizes = [4, 128], strides = [1, 1]} : vector<4x384xf32> to vector<4x128xf32>
    %61 = arith.addf %59, %60 : vector<4x128xf32>
    %cst_23 = arith.constant 5.000000e-01 : f32
    %62 = vector.broadcast %cst_23 : f32 to vector<4x128xf32>
    %63 = arith.mulf %62, %61 : vector<4x128xf32>
    %64 = math.tanh %63 : vector<4x128xf32>
    %cst_24 = arith.constant 1.000000e+00 : f32
    %65 = vector.broadcast %cst_24 : f32 to vector<4x128xf32>
    %66 = arith.addf %64, %65 : vector<4x128xf32>
    %cst_25 = arith.constant 5.000000e-01 : f32
    %67 = vector.broadcast %cst_25 : f32 to vector<4x128xf32>
    %68 = arith.mulf %67, %66 : vector<4x128xf32>
    %69 = vector.extract_strided_slice %47 {offsets = [0, 256], sizes = [4, 128], strides = [1, 1]} : vector<4x384xf32> to vector<4x128xf32>
    %70 = vector.extract_strided_slice %48 {offsets = [0, 256], sizes = [4, 128], strides = [1, 1]} : vector<4x384xf32> to vector<4x128xf32>
    %71 = arith.addf %70, %6 : vector<4x128xf32>
    %72 = arith.mulf %58, %71 : vector<4x128xf32>
    %73 = arith.addf %69, %72 : vector<4x128xf32>
    %74 = math.tanh %73 : vector<4x128xf32>
    %75 = arith.subf %40, %74 : vector<4x128xf32>
    %76 = arith.mulf %68, %75 : vector<4x128xf32>
    %77 = arith.addf %74, %76 : vector<4x128xf32>
    %78 = arith.index_cast %c1_i32 : i32 to index
    %c0_26 = arith.constant 0 : index
    %c0_27 = arith.constant 0 : index
    %79 = vector.load %arg6[%78, %c0_26, %c0_27] : memref<4x4x128xf32, #tpu.memory_space<vmem>>, vector<1x4x128xf32>
    %80 = vector.shape_cast %79 : vector<1x4x128xf32> to vector<4x128xf32>
    %81 = vector.shape_cast %77 : vector<4x128xf32> to vector<1x4x128xf32>
    tpu.vector_store %arg6[%78, %c0_26, %c0_27], %81 {strides = array<i32>} : memref<4x4x128xf32, #tpu.memory_space<vmem>>, vector<1x4x128xf32>,
    %c2_i32 = arith.constant 2 : i32
    %82 = arith.index_cast %c2_i32 : i32 to index
    %c0_28 = arith.constant 0 : index
    %c0_29 = arith.constant 0 : index
    %83 = vector.load %arg2[%82, %c0_28, %c0_29] : memref<4x4x384xf32, #tpu.memory_space<vmem>>, vector<1x4x384xf32>
    %84 = vector.shape_cast %83 : vector<1x4x384xf32> to vector<4x384xf32>
    %cst_30 = arith.constant dense<0.000000e+00> : vector<4x384xf32>
    %85 = tpu.matmul %77, %3, %cst_30 {dimension_numbers = #tpu.dot_dimension_numbers<[1], [0], [0], [1], [0, 0, 1, 1], [], []>} : vector<4x128xf32>, vector<128x384xf32>, vector<4x384xf32> -> vector<4x384xf32>
    %86 = vector.extract_strided_slice %84 {offsets = [0, 0], sizes = [4, 128], strides = [1, 1]} : vector<4x384xf32> to vector<4x128xf32>
    %87 = vector.extract_strided_slice %85 {offsets = [0, 0], sizes = [4, 128], strides = [1, 1]} : vector<4x384xf32> to vector<4x128xf32>
    %88 = arith.addf %86, %87 : vector<4x128xf32>
    %cst_31 = arith.constant 5.000000e-01 : f32
    %89 = vector.broadcast %cst_31 : f32 to vector<4x128xf32>
    %90 = arith.mulf %89, %88 : vector<4x128xf32>
    %91 = math.tanh %90 : vector<4x128xf32>
    %cst_32 = arith.constant 1.000000e+00 : f32
    %92 = vector.broadcast %cst_32 : f32 to vector<4x128xf32>
    %93 = arith.addf %91, %92 : vector<4x128xf32>
    %cst_33 = arith.constant 5.000000e-01 : f32
    %94 = vector.broadcast %cst_33 : f32 to vector<4x128xf32>
    %95 = arith.mulf %94, %93 : vector<4x128xf32>
    %96 = vector.extract_strided_slice %84 {offsets = [0, 128], sizes = [4, 128], strides = [1, 1]} : vector<4x384xf32> to vector<4x128xf32>
    %97 = vector.extract_strided_slice %85 {offsets = [0, 128], sizes = [4, 128], strides = [1, 1]} : vector<4x384xf32> to vector<4x128xf32>
    %98 = arith.addf %96, %97 : vector<4x128xf32>
    %cst_34 = arith.constant 5.000000e-01 : f32
    %99 = vector.broadcast %cst_34 : f32 to vector<4x128xf32>
    %100 = arith.mulf %99, %98 : vector<4x128xf32>
    %101 = math.tanh %100 : vector<4x128xf32>
    %cst_35 = arith.constant 1.000000e+00 : f32
    %102 = vector.broadcast %cst_35 : f32 to vector<4x128xf32>
    %103 = arith.addf %101, %102 : vector<4x128xf32>
    %cst_36 = arith.constant 5.000000e-01 : f32
    %104 = vector.broadcast %cst_36 : f32 to vector<4x128xf32>
    %105 = arith.mulf %104, %103 : vector<4x128xf32>
    %106 = vector.extract_strided_slice %84 {offsets = [0, 256], sizes = [4, 128], strides = [1, 1]} : vector<4x384xf32> to vector<4x128xf32>
    %107 = vector.extract_strided_slice %85 {offsets = [0, 256], sizes = [4, 128], strides = [1, 1]} : vector<4x384xf32> to vector<4x128xf32>
    %108 = arith.addf %107, %6 : vector<4x128xf32>
    %109 = arith.mulf %95, %108 : vector<4x128xf32>
    %110 = arith.addf %106, %109 : vector<4x128xf32>
    %111 = math.tanh %110 : vector<4x128xf32>
    %112 = arith.subf %77, %111 : vector<4x128xf32>
    %113 = arith.mulf %105, %112 : vector<4x128xf32>
    %114 = arith.addf %111, %113 : vector<4x128xf32>
    %115 = arith.index_cast %c2_i32 : i32 to index
    %c0_37 = arith.constant 0 : index
    %c0_38 = arith.constant 0 : index
    %116 = vector.load %arg6[%115, %c0_37, %c0_38] : memref<4x4x128xf32, #tpu.memory_space<vmem>>, vector<1x4x128xf32>
    %117 = vector.shape_cast %116 : vector<1x4x128xf32> to vector<4x128xf32>
    %118 = vector.shape_cast %114 : vector<4x128xf32> to vector<1x4x128xf32>
    tpu.vector_store %arg6[%115, %c0_37, %c0_38], %118 {strides = array<i32>} : memref<4x4x128xf32, #tpu.memory_space<vmem>>, vector<1x4x128xf32>,
    %c3_i32 = arith.constant 3 : i32
    %119 = arith.index_cast %c3_i32 : i32 to index
    %c0_39 = arith.constant 0 : index
    %c0_40 = arith.constant 0 : index
    %120 = vector.load %arg2[%119, %c0_39, %c0_40] : memref<4x4x384xf32, #tpu.memory_space<vmem>>, vector<1x4x384xf32>
    %121 = vector.shape_cast %120 : vector<1x4x384xf32> to vector<4x384xf32>
    %cst_41 = arith.constant dense<0.000000e+00> : vector<4x384xf32>
    %122 = tpu.matmul %114, %3, %cst_41 {dimension_numbers = #tpu.dot_dimension_numbers<[1], [0], [0], [1], [0, 0, 1, 1], [], []>} : vector<4x128xf32>, vector<128x384xf32>, vector<4x384xf32> -> vector<4x384xf32>
    %123 = vector.extract_strided_slice %121 {offsets = [0, 0], sizes = [4, 128], strides = [1, 1]} : vector<4x384xf32> to vector<4x128xf32>
    %124 = vector.extract_strided_slice %122 {offsets = [0, 0], sizes = [4, 128], strides = [1, 1]} : vector<4x384xf32> to vector<4x128xf32>
    %125 = arith.addf %123, %124 : vector<4x128xf32>
    %cst_42 = arith.constant 5.000000e-01 : f32
    %126 = vector.broadcast %cst_42 : f32 to vector<4x128xf32>
    %127 = arith.mulf %126, %125 : vector<4x128xf32>
    %128 = math.tanh %127 : vector<4x128xf32>
    %cst_43 = arith.constant 1.000000e+00 : f32
    %129 = vector.broadcast %cst_43 : f32 to vector<4x128xf32>
    %130 = arith.addf %128, %129 : vector<4x128xf32>
    %cst_44 = arith.constant 5.000000e-01 : f32
    %131 = vector.broadcast %cst_44 : f32 to vector<4x128xf32>
    %132 = arith.mulf %131, %130 : vector<4x128xf32>
    %133 = vector.extract_strided_slice %121 {offsets = [0, 128], sizes = [4, 128], strides = [1, 1]} : vector<4x384xf32> to vector<4x128xf32>
    %134 = vector.extract_strided_slice %122 {offsets = [0, 128], sizes = [4, 128], strides = [1, 1]} : vector<4x384xf32> to vector<4x128xf32>
    %135 = arith.addf %133, %134 : vector<4x128xf32>
    %cst_45 = arith.constant 5.000000e-01 : f32
    %136 = vector.broadcast %cst_45 : f32 to vector<4x128xf32>
    %137 = arith.mulf %136, %135 : vector<4x128xf32>
    %138 = math.tanh %137 : vector<4x128xf32>
    %cst_46 = arith.constant 1.000000e+00 : f32
    %139 = vector.broadcast %cst_46 : f32 to vector<4x128xf32>
    %140 = arith.addf %138, %139 : vector<4x128xf32>
    %cst_47 = arith.constant 5.000000e-01 : f32
    %141 = vector.broadcast %cst_47 : f32 to vector<4x128xf32>
    %142 = arith.mulf %141, %140 : vector<4x128xf32>
    %143 = vector.extract_strided_slice %121 {offsets = [0, 256], sizes = [4, 128], strides = [1, 1]} : vector<4x384xf32> to vector<4x128xf32>
    %144 = vector.extract_strided_slice %122 {offsets = [0, 256], sizes = [4, 128], strides = [1, 1]} : vector<4x384xf32> to vector<4x128xf32>
    %145 = arith.addf %144, %6 : vector<4x128xf32>
    %146 = arith.mulf %132, %145 : vector<4x128xf32>
    %147 = arith.addf %143, %146 : vector<4x128xf32>
    %148 = math.tanh %147 : vector<4x128xf32>
    %149 = arith.subf %114, %148 : vector<4x128xf32>
    %150 = arith.mulf %142, %149 : vector<4x128xf32>
    %151 = arith.addf %148, %150 : vector<4x128xf32>
    %152 = arith.index_cast %c3_i32 : i32 to index
    %c0_48 = arith.constant 0 : index
    %c0_49 = arith.constant 0 : index
    %153 = vector.load %arg6[%152, %c0_48, %c0_49] : memref<4x4x128xf32, #tpu.memory_space<vmem>>, vector<1x4x128xf32>
    %154 = vector.shape_cast %153 : vector<1x4x128xf32> to vector<4x128xf32>
    %155 = vector.shape_cast %151 : vector<4x128xf32> to vector<1x4x128xf32>
    tpu.vector_store %arg6[%152, %c0_48, %c0_49], %155 {strides = array<i32>} : memref<4x4x128xf32, #tpu.memory_space<vmem>>, vector<1x4x128xf32>,
    %c4_i32 = arith.constant 4 : i32
    %c0_50 = arith.constant 0 : index
    %c0_51 = arith.constant 0 : index
    %156 = vector.load %arg8[%c0_50, %c0_51] : memref<4x128xf32, #tpu.memory_space<vmem>>, vector<4x128xf32>
    tpu.vector_store %arg8[%c0_50, %c0_51], %151 {strides = array<i32>} : memref<4x128xf32, #tpu.memory_space<vmem>>, vector<4x128xf32>,
    %c1_i32_52 = arith.constant 1 : i32
    %157 = arith.cmpi eq, %arg1, %c1_i32_52 : i32
    %158 = arith.extui %157 : i1 to i32
    %c0_i32_53 = arith.constant 0 : i32
    %159 = arith.cmpi ne, %158, %c0_i32_53 : i32
    scf.if %159 {
      %c0_54 = arith.constant 0 : index
      %c0_55 = arith.constant 0 : index
      %160 = vector.load %arg7[%c0_54, %c0_55] : memref<4x128xf32, #tpu.memory_space<vmem>>, vector<4x128xf32>
      tpu.vector_store %arg7[%c0_54, %c0_55], %151 {strides = array<i32>} : memref<4x128xf32, #tpu.memory_space<vmem>>, vector<4x128xf32>,
    } else {
    }
    return
  }
  func.func @transform_0(%arg0: i32, %arg1: i32) -> (i32, i32, i32) {
    %c0_i32 = arith.constant 0 : i32
    %c0_i32_0 = arith.constant 0 : i32
    return %arg1, %arg0, %c0_i32 : i32, i32, i32
  }
  func.func @transform_1(%arg0: i32, %arg1: i32) -> (i32, i32) {
    %c0_i32 = arith.constant 0 : i32
    %c0_i32_0 = arith.constant 0 : i32
    return %arg0, %c0_i32 : i32, i32
  }
  func.func @transform_2(%arg0: i32, %arg1: i32) -> (i32, i32) {
    %c0_i32 = arith.constant 0 : i32
    %c0_i32_0 = arith.constant 0 : i32
    %c0_i32_1 = arith.constant 0 : i32
    return %c0_i32, %c0_i32_0 : i32, i32
  }
  func.func @transform_3(%arg0: i32, %arg1: i32) -> (i32, i32) {
    %c0_i32 = arith.constant 0 : i32
    %c0_i32_0 = arith.constant 0 : i32
    %c0_i32_1 = arith.constant 0 : i32
    return %c0_i32, %c0_i32_0 : i32, i32
  }
  func.func @transform_4(%arg0: i32, %arg1: i32) -> (i32, i32, i32) {
    %c0_i32 = arith.constant 0 : i32
    %c0_i32_0 = arith.constant 0 : i32
    return %arg1, %arg0, %c0_i32 : i32, i32, i32
  }
  func.func @transform_5(%arg0: i32, %arg1: i32) -> (i32, i32) {
    %c0_i32 = arith.constant 0 : i32
    %c0_i32_0 = arith.constant 0 : i32
    return %arg0, %c0_i32 : i32, i32
  }
}

</mosaic_0001>

<bundles_post_ra>
// kernel: decoder_gru_forward.3
= control target key start
LH: loop header
LB: loop body
LE: loop exit
PB: predicated region body
PF: predicated region fallthrough
CT: control target
= control target key end

     0   :  { %11 = vsyncpa [#allocation4], 0  ;;  %s1623_s0 = inlined_call_operand.vmem [shape: f32[8,4,384], index: 0, kind: input, shape index: {}]   ;;  %s1624_s1 = inlined_call_operand.vmem [shape: f32[4,128], index: 1, kind: input, shape index: {}]   ;;  %s1625_s2 = inlined_call_operand.vmem [shape: f32[128,384], index: 2, kind: input, shape index: {}]   ;;  %s1626_s3 = inlined_call_operand.vmem [shape: f32[1,128], index: 3, kind: input, shape index: {}]   ;;  %s1627_s4 = inlined_call_operand.hbm [shape: f32[8,4,128], index: 4, kind: output, shape index: {0}]   ;;  %s1628_s5 = inlined_call_operand.vmem [shape: f32[4,128], index: 5, kind: output, shape index: {1}]  }
   0x1   :  { %13 = vsyncpa [#allocation4 + $0x1], 0  ;;  %s1051_s18 = smov 0   ;;  %s1053_s19 = smov 0  }
   0x2   :  { %s1055_s20 = smov 0   ;;  %s1057_s21 = smov 0  }
   0x3   :  { %s1059_s22 = smov 0   ;;  %s1061_s23 = smov 0  }
   0x4 LB: > { %s829_s24 = sadd.s32 4294967295, %s1017_s23   ;;  %s830_s25 = sadd.s32 4294967294, %s1017_s23   ;;  %s1017_s23 = sphi %s1061_s23, %s19_s23   ;;  %s1013_s22 = sphi %s1059_s22, %s1635_s22   ;;  %s1009_s21 = sphi %s1057_s21, %s1634_s21   ;;  %s1005_s20 = sphi %s1055_s20, %s1633_s20   ;;  %s1001_s19 = sphi %s1053_s19, %s1632_s19   ;;  %s997_s18 = sphi %s1051_s18, %s1631_s18  }
   0x5   : > { %s28_s26 = sadd.s32 1, %s1013_s22  ;;  %s136_s27 = sadd.s32 1, %s1005_s20 }
   0x6   : > { %p29_p0 = scmp.ge.s32.totalorder %s28_s26, 2  ;;  %p146_p1 = scmp.ne.s32.totalorder %s1005_s20, %s1001_s19 }
   0x7   : > { %p147_p2 = scmp.eq.s32.totalorder %s829_s24, 1  ;;  %p152_p3 = scmp.ne.s32.totalorder %s1001_s19, %s997_s18 }
   0x8   : > { %s1637_s26 = smov (%p29_p0, %s28_s26), 0  ;;  %p153_p5 = scmp.eq.s32.totalorder %s830_s25, 1 }
   0x9   : > { %p1091_p4 = por %p147_p2, %p146_p1  ;;  %s131_s29 = ssub.s32 %s1013_s22, %s1637_s26 }
   0xa   : > { %p834_p6 = scmp.ge.s32.totalorder %s1017_s23, 1  ;;  %p134_p7 = scmp.eq.s32.totalorder %s131_s29, 0 }
   0xb   : > { %p1098_p8 = por %p153_p5, %p152_p3  ;;  %p224_p9 = scmp.lt.s32.totalorder %s1017_s23, 3 }
   0xc   : > { %s1104_s6 = scalar_select %p134_p7, %s1005_s20, %s136_s27  }
   0xd   : > { %p225_p10 = pnand %p834_p6, %p224_p9 }
   0xe   : > { %s256_s7 = sand.u32 (!%p225_p10), 1, %s1001_s19   ;;  %s836_s8 = sshll.u32 (!%p225_p10), %s1009_s21, 2 }
   0xf   : > { %228 = sbr.rel (%p225_p10) target bundleno = 722 (0x2d2), region = 36  ;;  %s835_s9 = sshll.u32 (!%p225_p10), %s256_s7, 4 }
  0x10   : > { %p266_p11 = scmp.lt.s32.totalorder (!%p225_p10), %s836_s8, 7  ;;  %s1115_s14 = scalar_lea.vmem (!%p225_p10), [#allocation3], %s835_s9 }
  0x11   : > { %p838_p12 = scmp.ne.s32.totalorder (!%p225_p10), %s1009_s21, 0 }
  0x14   : > { %s1639_s8 = smov (!%p266_p11, %s836_s8), 7  ;;  %288 = sbr.rel (%p838_p12) target bundleno = 27 (0x1b), region = 40 }
  0x15   : > { %s856_s10 = smul.u32 12, %s1639_s8 }
  0x17   : > { %s1113_s13 = scalar_lea.vmem %s1623_s0, %s856_s10 }
  0x19   : > { %v289_v0 = vld [vmem:[%s1624_s1] sm:$0xf] }
  0x1a   : > { %290 = vst [vmem:[#allocation2] sm:$0xf] %v289_v0 }
  0x1b PF: > { %v1124_v1 = vld [vmem:[%s1625_s2 + $0x168] sm:$0xff]  ;;  %v1129_v2 = vld [vmem:[%s1625_s2 + $0x150] sm:$0xff]  ;;  %v1135_v3 = vld [vmem:[%s1625_s2 + $0x178] sm:$0xff]  ;;  %p848_p13 = scmp.ne.s32.totalorder %s1009_s21, 1 }
  0x1c   : > { %346 = vmatpush.msra.mxu0 %v1124_v1  ;;  %430 = vmatpush.msra.mxu3 %v1124_v1  ;;  %v1141_v4 = vld [vmem:[%s1625_s2 + $0x138] sm:$0xff]  ;;  %v1147_v5 = vld [vmem:[%s1625_s2 + $0x160] sm:$0xff]  ;;  %v1153_v6 = vld [vmem:[%s1625_s2 + $0x148] sm:$0xff] }
  0x1d   : > { %386 = vmatpush.msra.mxu2 %v1135_v3  ;;  %v1158_v7 = vld [vmem:[%s1625_s2 + $0x170] sm:$0xff]  ;;  %v1164_v8 = vld [vmem:[%s1625_s2 + $0x120] sm:$0xff]  ;;  %v1171_v9 = vld [vmem:[%s1625_s2 + $0x158] sm:$0xff] }
  0x1e   : > { %347 = vmatpush.msra.mxu0 %v1129_v2  ;;  %431 = vmatpush.msra.mxu3 %v1129_v2  ;;  %v1177_v10 = vld [vmem:[%s1625_s2 + $0x130] sm:$0xff]  ;;  %v1182_v11 = vld [vmem:[%s1625_s2 + $0x140] sm:$0xff]  ;;  %v1188_v12 = vld [vmem:[%s1625_s2 + $0x108] sm:$0xff] }
  0x1f   : > { %387 = vmatpush.msra.mxu2 %v1147_v5  ;;  %366 = vmatpush.msra.mxu1 %v1158_v7  ;;  %v1196_v13 = vld [vmem:[%s1625_s2 + $0x118] sm:$0xff]  ;;  %v1201_v14 = vld [vmem:[%s1625_s2 + $0x128] sm:$0xff]  ;;  %v1207_v15 = vld [vmem:[%s1625_s2 + $0xf0] sm:$0xff] }
  0x20   : > { %348 = vmatpush.msra.mxu0 %v1141_v4  ;;  %432 = vmatpush.msra.mxu3 %v1141_v4  ;;  %v1215_v16 = vld [vmem:[%s1625_s2 + $0x100] sm:$0xff]  ;;  %v1220_v17 = vld [vmem:[%s1625_s2 + $0x110] sm:$0xff]  ;;  %v1226_v18 = vld [vmem:[%s1625_s2 + $0xd8] sm:$0xff] }
  0x21   : > { %388 = vmatpush.msra.mxu2 %v1153_v6  ;;  %367 = vmatpush.msra.mxu1 %v1171_v9  ;;  %v1234_v19 = vld [vmem:[%s1625_s2 + $0xe8] sm:$0xff]  ;;  %v1239_v20 = vld [vmem:[%s1625_s2 + $0xf8] sm:$0xff]  ;;  %v1245_v21 = vld [vmem:[%s1625_s2 + $0xc0] sm:$0xff] }
  0x22   : > { %349 = vmatpush.msra.mxu0 %v1164_v8  ;;  %433 = vmatpush.msra.mxu3 %v1164_v8  ;;  %v1253_v22 = vld [vmem:[%s1625_s2 + $0xd0] sm:$0xff]  ;;  %v1258_v23 = vld [vmem:[%s1625_s2 + $0xe0] sm:$0xff]  ;;  %v1264_v24 = vld [vmem:[%s1625_s2 + $0xa8] sm:$0xff] }
  0x23   : > { %389 = vmatpush.msra.mxu2 %v1177_v10  ;;  %368 = vmatpush.msra.mxu1 %v1182_v11  ;;  %v1272_v25 = vld [vmem:[%s1625_s2 + $0xb8] sm:$0xff]  ;;  %v1277_v26 = vld [vmem:[%s1625_s2 + $0xc8] sm:$0xff]  ;;  %v1283_v27 = vld [vmem:[%s1625_s2 + $0x90] sm:$0xff] }
  0x24   : > { %350 = vmatpush.msra.mxu0 %v1188_v12  ;;  %434 = vmatpush.msra.mxu3 %v1188_v12  ;;  %v1291_v28 = vld [vmem:[%s1625_s2 + $0xa0] sm:$0xff]  ;;  %v1296_v29 = vld [vmem:[%s1625_s2 + $0xb0] sm:$0xff]  ;;  %v1302_v30 = vld [vmem:[%s1625_s2 + $0x78] sm:$0xff] }
  0x25   : > { %390 = vmatpush.msra.mxu2 %v1196_v13  ;;  %369 = vmatpush.msra.mxu1 %v1201_v14  ;;  %v1310_v31 = vld [vmem:[%s1625_s2 + $0x88] sm:$0xff]  ;;  %v1315_v32 = vld [vmem:[%s1625_s2 + $0x98] sm:$0xff]  ;;  %v1321_v33 = vld [vmem:[%s1625_s2 + $0x60] sm:$0xff] }
  0x26   : > { %351 = vmatpush.msra.mxu0 %v1207_v15  ;;  %435 = vmatpush.msra.mxu3 %v1207_v15  ;;  %v1329_v34 = vld [vmem:[%s1625_s2 + $0x70] sm:$0xff]  ;;  %v1334_v35 = vld [vmem:[%s1625_s2 + $0x80] sm:$0xff]  ;;  %v1340_v36 = vld [vmem:[%s1625_s2 + $0x48] sm:$0xff] }
  0x27   : > { %391 = vmatpush.msra.mxu2 %v1215_v16  ;;  %370 = vmatpush.msra.mxu1 %v1220_v17  ;;  %v1348_v37 = vld [vmem:[%s1625_s2 + $0x58] sm:$0xff]  ;;  %v1353_v38 = vld [vmem:[%s1625_s2 + $0x68] sm:$0xff]  ;;  %v1359_v39 = vld [vmem:[%s1625_s2 + $0x30] sm:$0xff] }
  0x28   : > { %352 = vmatpush.msra.mxu0 %v1226_v18  ;;  %436 = vmatpush.msra.mxu3 %v1226_v18  ;;  %v1367_v40 = vld [vmem:[%s1625_s2 + $0x40] sm:$0xff]  ;;  %v1372_v41 = vld [vmem:[%s1625_s2 + $0x50] sm:$0xff]  ;;  %v1378_v42 = vld [vmem:[%s1625_s2 + $0x18] sm:$0xff] }
  0x29   : > { %392 = vmatpush.msra.mxu2 %v1234_v19  ;;  %371 = vmatpush.msra.mxu1 %v1239_v20  ;;  %v1386_v43 = vld [vmem:[%s1625_s2 + $0x28] sm:$0xff]  ;;  %v1391_v44 = vld [vmem:[%s1625_s2 + $0x38] sm:$0xff]  ;;  %v1397_v45 = vld [vmem:[%s1625_s2] sm:$0xff] }
  0x2a   : > { %353 = vmatpush.msra.mxu0 %v1245_v21  ;;  %437 = vmatpush.msra.mxu3 %v1245_v21  ;;  %v1402_v46 = vld [vmem:[#allocation2] sm:$0xf]  ;;  %v1407_v47 = vld [vmem:[%s1625_s2 + $0x10] sm:$0xff]  ;;  %v1424_v49 = vld [vmem:[%s1625_s2 + $0x8] sm:$0xff] }
  0x2b   : > { %393 = vmatpush.msra.mxu2 %v1253_v22  ;;  %372 = vmatpush.msra.mxu1 %v1258_v23  ;;  %v1415_v48 = vld [vmem:[%s1625_s2 + $0x20] sm:$0xff]  ;;  %v345_v0 = vld [vmem:[%s1113_s13 + $0x8] sm:$0xf] }
  0x2c   : > { %354 = vmatpush.msra.mxu0 %v1264_v24  ;;  %438 = vmatpush.msra.mxu3 %v1264_v24  ;;  %v344_v50 = vld [vmem:[%s1113_s13] sm:$0xff] }
  0x2d   : > { %394 = vmatpush.msra.mxu2 %v1272_v25  ;;  %373 = vmatpush.msra.mxu1 %v1277_v26  ;;  %v412_v53 = vrot.slane %v344_v50, 4  ;;  %v1546_v58 = vld [vmem:[%s1626_s3] ss:$0 sm:$0xff] }
  0x2e   : > { %355 = vmatpush.msra.mxu0 %v1283_v27  ;;  %439 = vmatpush.msra.mxu3 %v1283_v27 }
  0x2f   : > { %395 = vmatpush.msra.mxu2 %v1291_v28  ;;  %374 = vmatpush.msra.mxu1 %v1296_v29 }
  0x30   : > { %356 = vmatpush.msra.mxu0 %v1302_v30  ;;  %440 = vmatpush.msra.mxu3 %v1302_v30 }
  0x31   : > { %396 = vmatpush.msra.mxu2 %v1310_v31  ;;  %375 = vmatpush.msra.mxu1 %v1315_v32 }
  0x32   : > { %357 = vmatpush.msra.mxu0 %v1321_v33  ;;  %441 = vmatpush.msra.mxu3 %v1321_v33 }
  0x33   : > { %397 = vmatpush.msra.mxu2 %v1329_v34  ;;  %376 = vmatpush.msra.mxu1 %v1334_v35 }
  0x34   : > { %358 = vmatpush.msra.mxu0 %v1340_v36  ;;  %442 = vmatpush.msra.mxu3 %v1340_v36 }
  0x35   : > { %398 = vmatpush.msra.mxu2 %v1348_v37  ;;  %377 = vmatpush.msra.mxu1 %v1353_v38 }
  0x36   : > { %359 = vmatpush.msra.mxu0 %v1359_v39  ;;  %443 = vmatpush.msra.mxu3 %v1359_v39 }
  0x37   : > { %399 = vmatpush.msra.mxu2 %v1367_v40  ;;  %378 = vmatpush.msra.mxu1 %v1372_v41 }
  0x38   : > { %360 = vmatpush.msra.mxu0 %v1378_v42  ;;  %444 = vmatpush.msra.mxu3 %v1378_v42 }
  0x39   : > { %400 = vmatpush.msra.mxu2 %v1386_v43  ;;  %379 = vmatpush.msra.mxu1 %v1391_v44 }
  0x3a   : > { %361 = vmatpush.msra.mxu0 %v1397_v45  ;;  %445 = vmatpush.msra.mxu3 %v1397_v45 }
  0x3b   : > { %362 = vmatmul.f32.vlgmr.msra.gmra.mxu0 %v1402_v46  ;;  %401 = vmatpush.msra.mxu2 %v1407_v47 }
  0x3c   : > { %402 = vmatmul.f32.vlgmr.msra.gmra.mxu2 %v1402_v46  ;;  %380 = vmatpush.msra.mxu1 %v1415_v48 }
  0x3d   : > { %450 = vmatpush.msrb.mxu0 %v1158_v7  ;;  %515 = vmatpush.msrb.mxu2 %v1124_v1 }
  0x3e   : > { %381 = vmatpush.msra.mxu1 %v1424_v49  ;;  %535 = vmatpush.msrb.mxu3 %v1158_v7 }
  0x3f   : > { %382 = vmatmul.f32.vlgmr.msra.gmra.mxu1 %v1402_v46  ;;  %451 = vmatpush.msrb.mxu0 %v1171_v9 }
  0x40   : > { %470 = vmatpush.msrb.mxu1 %v1135_v3  ;;  %516 = vmatpush.msrb.mxu2 %v1129_v2 }
  0x41   : > { %452 = vmatpush.msrb.mxu0 %v1182_v11  ;;  %536 = vmatpush.msrb.mxu3 %v1171_v9 }
  0x42   : > { %471 = vmatpush.msrb.mxu1 %v1147_v5  ;;  %517 = vmatpush.msrb.mxu2 %v1141_v4 }
  0x43   : > { %453 = vmatpush.msrb.mxu0 %v1201_v14  ;;  %537 = vmatpush.msrb.mxu3 %v1182_v11 }
  0x44   : > { %472 = vmatpush.msrb.mxu1 %v1153_v6  ;;  %518 = vmatpush.msrb.mxu2 %v1164_v8 }
  0x45   : > { %454 = vmatpush.msrb.mxu0 %v1220_v17  ;;  %538 = vmatpush.msrb.mxu3 %v1201_v14 }
  0x46   : > { %473 = vmatpush.msrb.mxu1 %v1177_v10  ;;  %519 = vmatpush.msrb.mxu2 %v1188_v12 }
  0x47   : > { %455 = vmatpush.msrb.mxu0 %v1239_v20  ;;  %539 = vmatpush.msrb.mxu3 %v1220_v17 }
  0x48   : > { %474 = vmatpush.msrb.mxu1 %v1196_v13  ;;  %520 = vmatpush.msrb.mxu2 %v1207_v15 }
  0x49   : > { %456 = vmatpush.msrb.mxu0 %v1258_v23  ;;  %540 = vmatpush.msrb.mxu3 %v1239_v20 }
  0x4a   : > { %475 = vmatpush.msrb.mxu1 %v1215_v16  ;;  %521 = vmatpush.msrb.mxu2 %v1226_v18 }
  0x4b   : > { %457 = vmatpush.msrb.mxu0 %v1277_v26  ;;  %541 = vmatpush.msrb.mxu3 %v1258_v23 }
  0x4c   : > { %476 = vmatpush.msrb.mxu1 %v1234_v19  ;;  %522 = vmatpush.msrb.mxu2 %v1245_v21 }
  0x4d   : > { %458 = vmatpush.msrb.mxu0 %v1296_v29  ;;  %542 = vmatpush.msrb.mxu3 %v1277_v26 }
  0x4e   : > { %477 = vmatpush.msrb.mxu1 %v1253_v22  ;;  %523 = vmatpush.msrb.mxu2 %v1264_v24 }
  0x4f   : > { %459 = vmatpush.msrb.mxu0 %v1315_v32  ;;  %543 = vmatpush.msrb.mxu3 %v1296_v29 }
  0x50   : > { %478 = vmatpush.msrb.mxu1 %v1272_v25  ;;  %524 = vmatpush.msrb.mxu2 %v1283_v27 }
  0x51   : > { %460 = vmatpush.msrb.mxu0 %v1334_v35  ;;  %544 = vmatpush.msrb.mxu3 %v1315_v32 }
  0x52   : > { %479 = vmatpush.msrb.mxu1 %v1291_v28  ;;  %525 = vmatpush.msrb.mxu2 %v1302_v30 }
  0x53   : > { %461 = vmatpush.msrb.mxu0 %v1353_v38  ;;  %545 = vmatpush.msrb.mxu3 %v1334_v35 }
  0x54   : > { %480 = vmatpush.msrb.mxu1 %v1310_v31  ;;  %526 = vmatpush.msrb.mxu2 %v1321_v33 }
  0x55   : > { %462 = vmatpush.msrb.mxu0 %v1372_v41  ;;  %546 = vmatpush.msrb.mxu3 %v1353_v38 }
  0x56   : > { %481 = vmatpush.msrb.mxu1 %v1329_v34  ;;  %527 = vmatpush.msrb.mxu2 %v1340_v36 }
  0x57   : > { %463 = vmatpush.msrb.mxu0 %v1391_v44  ;;  %547 = vmatpush.msrb.mxu3 %v1372_v41 }
  0x58   : > { %482 = vmatpush.msrb.mxu1 %v1348_v37  ;;  %528 = vmatpush.msrb.mxu2 %v1359_v39 }
  0x59   : > { %464 = vmatpush.msrb.mxu0 %v1415_v48  ;;  %548 = vmatpush.msrb.mxu3 %v1391_v44 }
  0x5a   : > { %483 = vmatpush.msrb.mxu1 %v1367_v40  ;;  %529 = vmatpush.msrb.mxu2 %v1378_v42 }
  0x5b   : > { %465 = vmatpush.msrb.mxu0 %v1424_v49  ;;  %549 = vmatpush.msrb.mxu3 %v1415_v48 }
  0x5c   : > { %484 = vmatpush.msrb.mxu1 %v1386_v43  ;;  %530 = vmatpush.msrb.mxu2 %v1397_v45 }
  0x5d   : > { %555 = vmatpush.msra.mxu0 %v1135_v3  ;;  %550 = vmatpush.msrb.mxu3 %v1424_v49 }
  0x5e   : > { %485 = vmatpush.msrb.mxu1 %v1407_v47  ;;  %620 = vmatpush.msra.mxu2 %v1158_v7 }
  0x5f   : > { %556 = vmatpush.msra.mxu0 %v1147_v5 }
  0x60   : > { %600 = vmatpush.msra.mxu1 %v1124_v1  ;;  %621 = vmatpush.msra.mxu2 %v1171_v9 }
  0x61   : > { %557 = vmatpush.msra.mxu0 %v1153_v6 }
  0x62   : > { %601 = vmatpush.msra.mxu1 %v1129_v2  ;;  %622 = vmatpush.msra.mxu2 %v1182_v11 }
  0x63   : > { %558 = vmatpush.msra.mxu0 %v1177_v10 }
  0x64   : > { %602 = vmatpush.msra.mxu1 %v1141_v4  ;;  %623 = vmatpush.msra.mxu2 %v1201_v14 }
  0x65   : > { %559 = vmatpush.msra.mxu0 %v1196_v13 }
  0x66   : > { %603 = vmatpush.msra.mxu1 %v1164_v8  ;;  %624 = vmatpush.msra.mxu2 %v1220_v17 }
  0x67   : > { %560 = vmatpush.msra.mxu0 %v1215_v16 }
  0x68   : > { %604 = vmatpush.msra.mxu1 %v1188_v12  ;;  %625 = vmatpush.msra.mxu2 %v1239_v20 }
  0x69   : > { %561 = vmatpush.msra.mxu0 %v1234_v19 }
  0x6a   : > { %605 = vmatpush.msra.mxu1 %v1207_v15  ;;  %626 = vmatpush.msra.mxu2 %v1258_v23  ;;  %v840_v23 = vld [vmem:[%s1113_s13 + $0x14] sm:$0xf] }
  0x6b   : > { %562 = vmatpush.msra.mxu0 %v1253_v22 }
  0x6c   : > { %606 = vmatpush.msra.mxu1 %v1226_v18  ;;  %627 = vmatpush.msra.mxu2 %v1277_v26 }
  0x6d   : > { %563 = vmatpush.msra.mxu0 %v1272_v25 }
  0x6e   : > { %607 = vmatpush.msra.mxu1 %v1245_v21  ;;  %628 = vmatpush.msra.mxu2 %v1296_v29 }
  0x6f   : > { %564 = vmatpush.msra.mxu0 %v1291_v28 }
  0x70   : > { %608 = vmatpush.msra.mxu1 %v1264_v24  ;;  %629 = vmatpush.msra.mxu2 %v1315_v32 }
  0x71   : > { %565 = vmatpush.msra.mxu0 %v1310_v31 }
  0x72   : > { %609 = vmatpush.msra.mxu1 %v1283_v27  ;;  %630 = vmatpush.msra.mxu2 %v1334_v35 }
  0x73   : > { %566 = vmatpush.msra.mxu0 %v1329_v34 }
  0x74   : > { %610 = vmatpush.msra.mxu1 %v1302_v30  ;;  %631 = vmatpush.msra.mxu2 %v1353_v38 }
  0x75   : > { %567 = vmatpush.msra.mxu0 %v1348_v37 }
  0x76   : > { %611 = vmatpush.msra.mxu1 %v1321_v33  ;;  %632 = vmatpush.msra.mxu2 %v1372_v41  ;;  %v842_v33 = vld [vmem:[%s1113_s13 + $0x18] sm:$0xff] }
  0x77   : > { %568 = vmatpush.msra.mxu0 %v1367_v40 }
  0x78   : > { %612 = vmatpush.msra.mxu1 %v1340_v36  ;;  %633 = vmatpush.msra.mxu2 %v1391_v44  ;;  %v581_v36 = vrot.slane %v842_v33, 4 }
  0x79   : > { %569 = vmatpush.msra.mxu0 %v1386_v43 }
  0x7a   : > { %613 = vmatpush.msra.mxu1 %v1359_v39  ;;  %634 = vmatpush.msra.mxu2 %v1415_v48 }
  0x7b   : > { %570 = vmatpush.msra.mxu0 %v1407_v47 }
  0x7c   : > { %614 = vmatpush.msra.mxu1 %v1378_v42  ;;  %635 = vmatpush.msra.mxu2 %v1424_v49 }
  0x7e   : > { %615 = vmatpush.msra.mxu1 %v1397_v45 }
  0xb8   : > { %v363_v51 = vpop.f32.mrf.mxu0 }
  0xb9   : > { %v406_v52 = vadd.f32 %v363_v51, %v344_v50 }
  0xbb   : > { %v407_v54 = vmul.f32 0.5, %v406_v52 }
  0xbc   : > { %v383_v55 = vpop.f32.mrf.mxu1 }
  0xbd   : > { %915 = vtanh.f32 %v407_v54  ;;  %v414_v56 = vadd.f32 %v412_v53, %v383_v55 }
  0xbf   : > { %v415_v57 = vmul.f32 0.5, %v414_v56  ;;  %v403_v59 = vpop.f32.mrf.mxu2  ;;  %v845_v56 = vld [vmem:[%s1113_s13 + $0x24] sm:$0xff] }
  0xc0   : > { %v419_v62 = vadd.f32 %v1546_v58, %v403_v59 }
  0xc1   : > { %917 = vtanh.f32 %v415_v57 }
  0xc3   : > { %v916_v60 = vpop.eup %915 }
  0xc4   : > { %v409_v61 = vadd.f32 1.0, %v916_v60 }
  0xc6   : > { %v410_v63 = vmul.f32 0.5, %v409_v61  ;;  %v666_v61 = vrot.slane %v845_v56, 4 }
  0xc7   : > { %v918_v2 = vpop.eup %917 }
  0xc8   : > { %v420_v1 = vmul.f32 %v419_v62, %v410_v63  ;;  %v417_v7 = vadd.f32 1.0, %v918_v2 }
  0xca   : > { %v421_v4 = vadd.f32 %v420_v1, %v345_v0  ;;  %v418_v8 = vmul.f32 0.5, %v417_v7 }
  0xcc   : > { %919 = vtanh.f32 %v421_v4 }
  0xd2   : > { %v920_v9 = vpop.eup %919 }
  0xd3   : > { %v423_v11 = vsub.f32 %v1402_v46, %v920_v9  ;;  %v843_v46 = vld [vmem:[%s1113_s13 + $0x20] sm:$0xf] }
  0xd5   : > { %v424_v12 = vmul.f32 %v423_v11, %v418_v8 }
  0xd7   : > { %v425_v14 = vadd.f32 %v920_v9, %v424_v12  ;;  %v846_v9 = vld [vmem:[%s1113_s13 + $0x2c] sm:$0xf] }
  0xd9   : > { %426 = vst [vmem:[%s1115_s14] sm:$0xf] %v425_v14  ;;  %446 = vmatmul.f32.vlgmr.msra.gmra.mxu3 %v425_v14  ;;  %466 = vmatmul.f32.vlgmr.msrb.gmra.mxu0 %v425_v14 }
  0xda   : > { %486 = vmatmul.f32.vlgmr.msrb.gmra.mxu1 %v425_v14  ;;  %640 = vmatpush.msra.mxu3 %v1135_v3  ;;  %v839_v3 = vld [vmem:[%s1113_s13 + $0xc] sm:$0xff] }
  0xdc   : > { %641 = vmatpush.msra.mxu3 %v1147_v5 }
  0xde   : > { %642 = vmatpush.msra.mxu3 %v1153_v6 }
  0xe0   : > { %643 = vmatpush.msra.mxu3 %v1177_v10  ;;  %v496_v10 = vrot.slane %v839_v3, 4 }
  0xe2   : > { %644 = vmatpush.msra.mxu3 %v1196_v13 }
  0xe4   : > { %645 = vmatpush.msra.mxu3 %v1215_v16 }
  0xe6   : > { %646 = vmatpush.msra.mxu3 %v1234_v19 }
  0xe8   : > { %647 = vmatpush.msra.mxu3 %v1253_v22 }
  0xea   : > { %648 = vmatpush.msra.mxu3 %v1272_v25 }
  0xec   : > { %649 = vmatpush.msra.mxu3 %v1291_v28 }
  0xee   : > { %650 = vmatpush.msra.mxu3 %v1310_v31 }
  0xf0   : > { %651 = vmatpush.msra.mxu3 %v1329_v34 }
  0xf2   : > { %652 = vmatpush.msra.mxu3 %v1348_v37 }
  0xf4   : > { %653 = vmatpush.msra.mxu3 %v1367_v40 }
  0xf6   : > { %654 = vmatpush.msra.mxu3 %v1386_v43 }
  0xf8   : > { %655 = vmatpush.msra.mxu3 %v1407_v47 }
 0x156   : > { %v467_v13 = vpop.f32.mrf.mxu0 }
 0x157   : > { %v498_v16 = vadd.f32 %v496_v10, %v467_v13  ;;  %v487_v19 = vpop.f32.mrf.mxu1 }
 0x158   : > { %v503_v21 = vadd.f32 %v1546_v58, %v487_v19 }
 0x159   : > { %v499_v17 = vmul.f32 0.5, %v498_v16 }
 0x15c   : > { %v447_v5 = vpop.f32.mrf.mxu3 }
 0x15d   : > { %v490_v6 = vadd.f32 %v839_v3, %v447_v5 }
 0x15f   : > { %v491_v15 = vmul.f32 0.5, %v490_v6 }
 0x161   : > { %921 = vtanh.f32 %v491_v15 }
 0x162   : > { %923 = vtanh.f32 %v499_v17 }
 0x167   : > { %v922_v18 = vpop.eup %921 }
 0x168   : > { %v493_v20 = vadd.f32 1.0, %v922_v18  ;;  %v924_v26 = vpop.eup %923 }
 0x169   : > { %v501_v27 = vadd.f32 1.0, %v924_v26 }
 0x16a   : > { %v494_v22 = vmul.f32 0.5, %v493_v20 }
 0x16b   : > { %v502_v29 = vmul.f32 0.5, %v501_v27 }
 0x16c   : > { %v504_v24 = vmul.f32 %v503_v21, %v494_v22 }
 0x16e   : > { %v505_v25 = vadd.f32 %v840_v23, %v504_v24 }
 0x170   : > { %925 = vtanh.f32 %v505_v25 }
 0x176   : > { %v926_v28 = vpop.eup %925 }
 0x177   : > { %v507_v30 = vsub.f32 %v425_v14, %v926_v28 }
 0x179   : > { %v508_v31 = vmul.f32 %v507_v30, %v502_v29 }
 0x17b   : > { %v509_v32 = vadd.f32 %v926_v28, %v508_v31 }
 0x17d   : > { %841 = vst [vmem:[%s1115_s14 + $0x4] sm:$0xf] %v509_v32  ;;  %531 = vmatmul.f32.vlgmr.msrb.gmra.mxu2 %v509_v32  ;;  %551 = vmatmul.f32.vlgmr.msrb.gmra.mxu3 %v509_v32 }
 0x17e   : > { %571 = vmatmul.f32.vlgmr.msra.gmra.mxu0 %v509_v32 }
 0x1fb   : > { %v572_v42 = vpop.f32.mrf.mxu0 }
 0x1fc   : > { %v588_v44 = vadd.f32 %v1546_v58, %v572_v42 }
 0x200   : > { %v532_v34 = vpop.f32.mrf.mxu2  ;;  %v552_v38 = vpop.f32.mrf.mxu3 }
 0x201   : > { %v575_v35 = vadd.f32 %v842_v33, %v532_v34  ;;  %v583_v39 = vadd.f32 %v581_v36, %v552_v38 }
 0x203   : > { %v576_v37 = vmul.f32 0.5, %v575_v35  ;;  %v584_v40 = vmul.f32 0.5, %v583_v39 }
 0x205   : > { %927 = vtanh.f32 %v576_v37 }
 0x206   : > { %929 = vtanh.f32 %v584_v40 }
 0x20b   : > { %v928_v41 = vpop.eup %927 }
 0x20c   : > { %v578_v43 = vadd.f32 1.0, %v928_v41  ;;  %v930_v49 = vpop.eup %929 }
 0x20d   : > { %v586_v50 = vadd.f32 1.0, %v930_v49 }
 0x20e   : > { %v579_v45 = vmul.f32 0.5, %v578_v43 }
 0x20f   : > { %v587_v52 = vmul.f32 0.5, %v586_v50 }
 0x210   : > { %v589_v47 = vmul.f32 %v588_v44, %v579_v45 }
 0x212   : > { %v590_v48 = vadd.f32 %v843_v46, %v589_v47 }
 0x214   : > { %931 = vtanh.f32 %v590_v48 }
 0x21a   : > { %v932_v51 = vpop.eup %931 }
 0x21b   : > { %v592_v53 = vsub.f32 %v509_v32, %v932_v51 }
 0x21d   : > { %v593_v54 = vmul.f32 %v592_v53, %v587_v52 }
 0x21f   : > { %v594_v55 = vadd.f32 %v932_v51, %v593_v54 }
 0x221   : > { %844 = vst [vmem:[%s1115_s14 + $0x8] sm:$0xf] %v594_v55  ;;  %616 = vmatmul.f32.vlgmr.msra.gmra.mxu1 %v594_v55  ;;  %636 = vmatmul.f32.vlgmr.msra.gmra.mxu2 %v594_v55 }
 0x222   : > { %656 = vmatmul.f32.vlgmr.msra.gmra.mxu3 %v594_v55 }
 0x29e   : > { %v617_v57 = vpop.f32.mrf.mxu1 }
 0x29f   : > { %v660_v59 = vadd.f32 %v845_v56, %v617_v57 }
 0x2a1   : > { %v661_v60 = vmul.f32 0.5, %v660_v59 }
 0x2a3   : > { %933 = vtanh.f32 %v661_v60 }
 0x2a4   : > { %v637_v62 = vpop.f32.mrf.mxu2 }
 0x2a5   : > { %v668_v63 = vadd.f32 %v666_v61, %v637_v62  ;;  %v657_v2 = vpop.f32.mrf.mxu3 }
 0x2a6   : > { %v673_v8 = vadd.f32 %v1546_v58, %v657_v2 }
 0x2a7   : > { %v669_v0 = vmul.f32 0.5, %v668_v63 }
 0x2a9   : > { %v934_v1 = vpop.eup %933  ;;  %935 = vtanh.f32 %v669_v0 }
 0x2aa   : > { %v663_v4 = vadd.f32 1.0, %v934_v1 }
 0x2ac   : > { %v664_v7 = vmul.f32 0.5, %v663_v4 }
 0x2ae   : > { %v674_v11 = vmul.f32 %v673_v8, %v664_v7 }
 0x2af   : > { %v936_v14 = vpop.eup %935 }
 0x2b0   : > { %v675_v12 = vadd.f32 %v846_v9, %v674_v11  ;;  %v671_v3 = vadd.f32 1.0, %v936_v14 }
 0x2b2   : > { %937 = vtanh.f32 %v675_v12  ;;  %v672_v6 = vmul.f32 0.5, %v671_v3 }
 0x2b8   : > { %v938_v5 = vpop.eup %937 }
 0x2b9   : > { %v677_v10 = vsub.f32 %v594_v55, %v938_v5 }
 0x2bb   : > { %v678_v13 = vmul.f32 %v677_v10, %v672_v6 }
 0x2bc   : > { %686 = sbr.rel (%p848_p13) target bundleno = 706 (0x2c2), region = 44 }
 0x2bd   : > { %v679_v15 = vadd.f32 %v938_v5, %v678_v13 }
 0x2bf   : > { %847 = vst [vmem:[%s1115_s14 + $0xc] sm:$0xf] %v679_v15 }
 0x2c0   : > { %682 = vst [vmem:[#allocation2] sm:$0xf] %v679_v15 }
 0x2c1   : > { %687 = vst [vmem:[%s1628_s5] sm:$0xf] %v679_v15 }
 0x2c2 PF: > { %s855_s13 = sshll.u32 %s1009_s21, 4  ;;  %s706_s10 = sshll.u32 %s1115_s14, 4  ;;  %s707_s10 = int_to_ptr.vmem [resolvable:$true] %s706_s10 }
 0x2c3   : > { %s705_s9 = scalar_lea.hbm %s1627_s4, %s855_s13  ;;  %s689_s12 = scalar_lea.sflag [#allocation4], %s256_s7 }
 0x2c4   : > { %s708_s11 = sshll.u32 %s705_s9, 4  ;;  %s959_s21 = scalar_lea.hbm %s1627_s4, 32  ;;  %s709_s11 = int_to_ptr.hbm [resolvable:$true] %s708_s11 }
 0x2c5   : > { %s953_s15 = sshra.s32 %s709_s11, 4  ;;  %s954_s15 = int_to_ptr.hbm [resolvable:$true] %s953_s15 }
 0x2c6   : > { %s955_s16 = scalar_lea.hbm %s954_s15, 16  ;;  %p960_p3 = scmp.lt.s32.totalorder %s954_s15, %s1627_s4 }
 0x2c7   : > { %p956_p0 = scmp.ne.s32.totalorder %s954_s15, %s955_s16  ;;  %p961_p5 = scmp.lt.s32.totalorder %s959_s21, %s955_s16 }
 0x2c9   : > { %p957_p1 = pnand %p956_p0, %p1091_p4  ;;  %p962_p6 = por %p961_p5, %p960_p3 }
 0x2cb   : > { %p958_p2 = pneg %p957_p1 }
 0x2cd   : > { %p963_p7 = pnand %p962_p6, %p958_p2 }
 0x2cf   : > { %966 = shalt.err (!%p963_p7)
}
 0x2d0   : > { %s1019_s7 = smov 64   ;;  %s1020_s14 = smov 4  }
 0x2d1   : > { %857 = dma.vmem_to_hbm [thread:$0]  (%p1091_p4), %s707_s10, 256, %s709_s11, %s689_s12, %s1019_s7, %s1019_s7, %s1020_s14  }
 0x2d2 PF: > { %p863_p9 = scmp.ge.s32.totalorder %s1017_s23, 2  ;;  %s733_s13 = sand.u32 1, %s997_s18  }
 0x2d3   : > { %s734_s29 = scalar_lea.sflag [#allocation4], %s733_s13 }
 0x2d4   : > { %p860_p10 = pnand %p863_p9, %p1098_p8 }
 0x2d6   : > { %p861_p11 = pneg %p860_p10 }
 0x2d8   : > { %992 = dma.done.wait (%p861_p11), %s734_s29, 256  }
 0x2d9   : > { %994 = vsyncadd (%p861_p11), %s734_s29, 4294967040  ;;  %s19_s23 = sadd.s32 1, %s1017_s23   ;;  %s1631_s18 = smov %s1001_s19 }
 0x2da   : > { %p16_p12 = scmp.ge.s32.totalorder %s19_s23, 4   ;;  %s1632_s19 = smov %s1005_s20 }
 0x2db   : > { %s1633_s20 = smov %s1104_s6  ;;  %s1634_s21 = smov %s1013_s22 }
 0x2dc   : > { %s1635_s22 = smov %s1637_s26  ;;  %18 = sbr.rel (!%p16_p12) target bundleno = 4 (0x4), region = 100 }
 0x2e1   :  { %740 = vsyncpa [#allocation4], 1 }
 0x2e2   :  { %742 = vsyncpa [#allocation4 + $0x1], 1 }

// kernel: decoder_gru_forward.2
= control target key start
LH: loop header
LB: loop body
LE: loop exit
PB: predicated region body
PF: predicated region fallthrough
CT: control target
= control target key end

     0   :  { %s951_s18 = smov 0   ;;  %s953_s19 = smov 0   ;;  %s1458_s0 = inlined_call_operand.vmem [shape: f32[8,4,384], index: 0, kind: input, shape index: {}]   ;;  %s1459_s1 = inlined_call_operand.vmem [shape: f32[4,128], index: 1, kind: input, shape index: {}]   ;;  %s1460_s2 = inlined_call_operand.vmem [shape: f32[128,384], index: 2, kind: input, shape index: {}]   ;;  %s1461_s3 = inlined_call_operand.vmem [shape: f32[1,128], index: 3, kind: input, shape index: {}]   ;;  %s1462_s4 = inlined_call_operand.vmem [shape: f32[8,4,128], index: 4, kind: output, shape index: {0}]   ;;  %s1463_s5 = inlined_call_operand.vmem [shape: f32[4,128], index: 5, kind: output, shape index: {1}]  }
   0x1   :  { %s955_s20 = smov 0  }
   0x2 LB: > { %s25_s21 = sadd.s32 1, %s915_s19  ;;  %p828_p0 = scmp.ge.s32.totalorder %s919_s20, 1  ;;  %s919_s20 = sphi %s955_s20, %s16_s20   ;;  %s915_s19 = sphi %s953_s19, %s1465_s19   ;;  %s911_s18 = sphi %s951_s18, %s1464_s18  }
   0x3   : > { %p26_p1 = scmp.ge.s32.totalorder %s25_s21, 2  ;;  %p221_p2 = scmp.lt.s32.totalorder %s919_s20, 3 }
   0x5   : > { %s1467_s21 = smov (%p26_p1, %s25_s21), 0  ;;  %p222_p3 = pnand %p828_p0, %p221_p2 }
   0x6   : > { %s829_s22 = sshll.u32 (!%p222_p3), %s911_s18, 2  ;;  %p833_p5 = scmp.ne.s32.totalorder (!%p222_p3), %s911_s18, 0 }
   0x7   : > { %225 = sbr.rel (%p222_p3) target bundleno = 698 (0x2ba), region = 36  ;;  %p266_p4 = scmp.lt.s32.totalorder (!%p222_p3), %s829_s22, 7 }
   0xc   : > { %s1469_s22 = smov (!%p266_p4, %s829_s22), 7  ;;  %296 = sbr.rel (%p833_p5) target bundleno = 19 (0x13), region = 40 }
   0xd   : > { %s847_s23 = smul.u32 12, %s1469_s22  ;;  %s832_s24 = sshll.u32 %s1469_s22, 2 }
   0xe   : > { %s975_s27 = scalar_lea.vmem %s1462_s4, %s832_s24 }
   0xf   : > { %s980_s30 = scalar_lea.vmem %s1458_s0, %s847_s23 }
  0x11   : > { %v297_v0 = vld [vmem:[%s1459_s1] sm:$0xf] }
  0x12   : > { %298 = vst [vmem:[#allocation2] sm:$0xf] %v297_v0 }
  0x13 PF: > { %v989_v1 = vld [vmem:[%s1460_s2 + $0x168] sm:$0xff]  ;;  %v994_v2 = vld [vmem:[%s1460_s2 + $0x150] sm:$0xff]  ;;  %v1000_v3 = vld [vmem:[%s1460_s2 + $0x178] sm:$0xff]  ;;  %p843_p6 = scmp.ne.s32.totalorder %s911_s18, 1 }
  0x14   : > { %354 = vmatpush.msra.mxu0 %v989_v1  ;;  %438 = vmatpush.msra.mxu3 %v989_v1  ;;  %v1006_v4 = vld [vmem:[%s1460_s2 + $0x138] sm:$0xff]  ;;  %v1012_v5 = vld [vmem:[%s1460_s2 + $0x160] sm:$0xff]  ;;  %v1018_v6 = vld [vmem:[%s1460_s2 + $0x148] sm:$0xff] }
  0x15   : > { %394 = vmatpush.msra.mxu2 %v1000_v3  ;;  %v1023_v7 = vld [vmem:[%s1460_s2 + $0x170] sm:$0xff]  ;;  %v1029_v8 = vld [vmem:[%s1460_s2 + $0x120] sm:$0xff]  ;;  %v1036_v9 = vld [vmem:[%s1460_s2 + $0x158] sm:$0xff] }
  0x16   : > { %355 = vmatpush.msra.mxu0 %v994_v2  ;;  %439 = vmatpush.msra.mxu3 %v994_v2  ;;  %v1042_v10 = vld [vmem:[%s1460_s2 + $0x130] sm:$0xff]  ;;  %v1047_v11 = vld [vmem:[%s1460_s2 + $0x140] sm:$0xff]  ;;  %v1053_v12 = vld [vmem:[%s1460_s2 + $0x108] sm:$0xff] }
  0x17   : > { %395 = vmatpush.msra.mxu2 %v1012_v5  ;;  %374 = vmatpush.msra.mxu1 %v1023_v7  ;;  %v1061_v13 = vld [vmem:[%s1460_s2 + $0x118] sm:$0xff]  ;;  %v1066_v14 = vld [vmem:[%s1460_s2 + $0x128] sm:$0xff]  ;;  %v1072_v15 = vld [vmem:[%s1460_s2 + $0xf0] sm:$0xff] }
  0x18   : > { %356 = vmatpush.msra.mxu0 %v1006_v4  ;;  %440 = vmatpush.msra.mxu3 %v1006_v4  ;;  %v1080_v16 = vld [vmem:[%s1460_s2 + $0x100] sm:$0xff]  ;;  %v1085_v17 = vld [vmem:[%s1460_s2 + $0x110] sm:$0xff]  ;;  %v1091_v18 = vld [vmem:[%s1460_s2 + $0xd8] sm:$0xff] }
  0x19   : > { %396 = vmatpush.msra.mxu2 %v1018_v6  ;;  %375 = vmatpush.msra.mxu1 %v1036_v9  ;;  %v1099_v19 = vld [vmem:[%s1460_s2 + $0xe8] sm:$0xff]  ;;  %v1104_v20 = vld [vmem:[%s1460_s2 + $0xf8] sm:$0xff]  ;;  %v1110_v21 = vld [vmem:[%s1460_s2 + $0xc0] sm:$0xff] }
  0x1a   : > { %357 = vmatpush.msra.mxu0 %v1029_v8  ;;  %441 = vmatpush.msra.mxu3 %v1029_v8  ;;  %v1118_v22 = vld [vmem:[%s1460_s2 + $0xd0] sm:$0xff]  ;;  %v1123_v23 = vld [vmem:[%s1460_s2 + $0xe0] sm:$0xff]  ;;  %v1129_v24 = vld [vmem:[%s1460_s2 + $0xa8] sm:$0xff] }
  0x1b   : > { %397 = vmatpush.msra.mxu2 %v1042_v10  ;;  %376 = vmatpush.msra.mxu1 %v1047_v11  ;;  %v1137_v25 = vld [vmem:[%s1460_s2 + $0xb8] sm:$0xff]  ;;  %v1142_v26 = vld [vmem:[%s1460_s2 + $0xc8] sm:$0xff]  ;;  %v1148_v27 = vld [vmem:[%s1460_s2 + $0x90] sm:$0xff] }
  0x1c   : > { %358 = vmatpush.msra.mxu0 %v1053_v12  ;;  %442 = vmatpush.msra.mxu3 %v1053_v12  ;;  %v1156_v28 = vld [vmem:[%s1460_s2 + $0xa0] sm:$0xff]  ;;  %v1161_v29 = vld [vmem:[%s1460_s2 + $0xb0] sm:$0xff]  ;;  %v1167_v30 = vld [vmem:[%s1460_s2 + $0x78] sm:$0xff] }
  0x1d   : > { %398 = vmatpush.msra.mxu2 %v1061_v13  ;;  %377 = vmatpush.msra.mxu1 %v1066_v14  ;;  %v1175_v31 = vld [vmem:[%s1460_s2 + $0x88] sm:$0xff]  ;;  %v1180_v32 = vld [vmem:[%s1460_s2 + $0x98] sm:$0xff]  ;;  %v1186_v33 = vld [vmem:[%s1460_s2 + $0x60] sm:$0xff] }
  0x1e   : > { %359 = vmatpush.msra.mxu0 %v1072_v15  ;;  %443 = vmatpush.msra.mxu3 %v1072_v15  ;;  %v1194_v34 = vld [vmem:[%s1460_s2 + $0x70] sm:$0xff]  ;;  %v1199_v35 = vld [vmem:[%s1460_s2 + $0x80] sm:$0xff]  ;;  %v1205_v36 = vld [vmem:[%s1460_s2 + $0x48] sm:$0xff] }
  0x1f   : > { %399 = vmatpush.msra.mxu2 %v1080_v16  ;;  %378 = vmatpush.msra.mxu1 %v1085_v17  ;;  %v1213_v37 = vld [vmem:[%s1460_s2 + $0x58] sm:$0xff]  ;;  %v1218_v38 = vld [vmem:[%s1460_s2 + $0x68] sm:$0xff]  ;;  %v1224_v39 = vld [vmem:[%s1460_s2 + $0x30] sm:$0xff] }
  0x20   : > { %360 = vmatpush.msra.mxu0 %v1091_v18  ;;  %444 = vmatpush.msra.mxu3 %v1091_v18  ;;  %v1232_v40 = vld [vmem:[%s1460_s2 + $0x40] sm:$0xff]  ;;  %v1237_v41 = vld [vmem:[%s1460_s2 + $0x50] sm:$0xff]  ;;  %v1243_v42 = vld [vmem:[%s1460_s2 + $0x18] sm:$0xff] }
  0x21   : > { %400 = vmatpush.msra.mxu2 %v1099_v19  ;;  %379 = vmatpush.msra.mxu1 %v1104_v20  ;;  %v1251_v43 = vld [vmem:[%s1460_s2 + $0x28] sm:$0xff]  ;;  %v1256_v44 = vld [vmem:[%s1460_s2 + $0x38] sm:$0xff]  ;;  %v1262_v45 = vld [vmem:[%s1460_s2] sm:$0xff] }
  0x22   : > { %361 = vmatpush.msra.mxu0 %v1110_v21  ;;  %445 = vmatpush.msra.mxu3 %v1110_v21  ;;  %v1267_v46 = vld [vmem:[#allocation2] sm:$0xf]  ;;  %v1272_v47 = vld [vmem:[%s1460_s2 + $0x10] sm:$0xff]  ;;  %v1289_v49 = vld [vmem:[%s1460_s2 + $0x8] sm:$0xff] }
  0x23   : > { %401 = vmatpush.msra.mxu2 %v1118_v22  ;;  %380 = vmatpush.msra.mxu1 %v1123_v23  ;;  %v1280_v48 = vld [vmem:[%s1460_s2 + $0x20] sm:$0xff]  ;;  %v353_v0 = vld [vmem:[%s980_s30 + $0x8] sm:$0xf] }
  0x24   : > { %362 = vmatpush.msra.mxu0 %v1129_v24  ;;  %446 = vmatpush.msra.mxu3 %v1129_v24  ;;  %v352_v50 = vld [vmem:[%s980_s30] sm:$0xff] }
  0x25   : > { %402 = vmatpush.msra.mxu2 %v1137_v25  ;;  %381 = vmatpush.msra.mxu1 %v1142_v26  ;;  %v420_v53 = vrot.slane %v352_v50, 4  ;;  %v1411_v58 = vld [vmem:[%s1461_s3] ss:$0 sm:$0xff] }
  0x26   : > { %363 = vmatpush.msra.mxu0 %v1148_v27  ;;  %447 = vmatpush.msra.mxu3 %v1148_v27 }
  0x27   : > { %403 = vmatpush.msra.mxu2 %v1156_v28  ;;  %382 = vmatpush.msra.mxu1 %v1161_v29 }
  0x28   : > { %364 = vmatpush.msra.mxu0 %v1167_v30  ;;  %448 = vmatpush.msra.mxu3 %v1167_v30 }
  0x29   : > { %404 = vmatpush.msra.mxu2 %v1175_v31  ;;  %383 = vmatpush.msra.mxu1 %v1180_v32 }
  0x2a   : > { %365 = vmatpush.msra.mxu0 %v1186_v33  ;;  %449 = vmatpush.msra.mxu3 %v1186_v33 }
  0x2b   : > { %405 = vmatpush.msra.mxu2 %v1194_v34  ;;  %384 = vmatpush.msra.mxu1 %v1199_v35 }
  0x2c   : > { %366 = vmatpush.msra.mxu0 %v1205_v36  ;;  %450 = vmatpush.msra.mxu3 %v1205_v36 }
  0x2d   : > { %406 = vmatpush.msra.mxu2 %v1213_v37  ;;  %385 = vmatpush.msra.mxu1 %v1218_v38 }
  0x2e   : > { %367 = vmatpush.msra.mxu0 %v1224_v39  ;;  %451 = vmatpush.msra.mxu3 %v1224_v39 }
  0x2f   : > { %407 = vmatpush.msra.mxu2 %v1232_v40  ;;  %386 = vmatpush.msra.mxu1 %v1237_v41 }
  0x30   : > { %368 = vmatpush.msra.mxu0 %v1243_v42  ;;  %452 = vmatpush.msra.mxu3 %v1243_v42 }
  0x31   : > { %408 = vmatpush.msra.mxu2 %v1251_v43  ;;  %387 = vmatpush.msra.mxu1 %v1256_v44 }
  0x32   : > { %369 = vmatpush.msra.mxu0 %v1262_v45  ;;  %453 = vmatpush.msra.mxu3 %v1262_v45 }
  0x33   : > { %370 = vmatmul.f32.vlgmr.msra.gmra.mxu0 %v1267_v46  ;;  %409 = vmatpush.msra.mxu2 %v1272_v47 }
  0x34   : > { %410 = vmatmul.f32.vlgmr.msra.gmra.mxu2 %v1267_v46  ;;  %388 = vmatpush.msra.mxu1 %v1280_v48 }
  0x35   : > { %458 = vmatpush.msrb.mxu0 %v1023_v7  ;;  %523 = vmatpush.msrb.mxu2 %v989_v1 }
  0x36   : > { %389 = vmatpush.msra.mxu1 %v1289_v49  ;;  %543 = vmatpush.msrb.mxu3 %v1023_v7 }
  0x37   : > { %390 = vmatmul.f32.vlgmr.msra.gmra.mxu1 %v1267_v46  ;;  %459 = vmatpush.msrb.mxu0 %v1036_v9 }
  0x38   : > { %478 = vmatpush.msrb.mxu1 %v1000_v3  ;;  %524 = vmatpush.msrb.mxu2 %v994_v2 }
  0x39   : > { %460 = vmatpush.msrb.mxu0 %v1047_v11  ;;  %544 = vmatpush.msrb.mxu3 %v1036_v9 }
  0x3a   : > { %479 = vmatpush.msrb.mxu1 %v1012_v5  ;;  %525 = vmatpush.msrb.mxu2 %v1006_v4 }
  0x3b   : > { %461 = vmatpush.msrb.mxu0 %v1066_v14  ;;  %545 = vmatpush.msrb.mxu3 %v1047_v11 }
  0x3c   : > { %480 = vmatpush.msrb.mxu1 %v1018_v6  ;;  %526 = vmatpush.msrb.mxu2 %v1029_v8 }
  0x3d   : > { %462 = vmatpush.msrb.mxu0 %v1085_v17  ;;  %546 = vmatpush.msrb.mxu3 %v1066_v14 }
  0x3e   : > { %481 = vmatpush.msrb.mxu1 %v1042_v10  ;;  %527 = vmatpush.msrb.mxu2 %v1053_v12 }
  0x3f   : > { %463 = vmatpush.msrb.mxu0 %v1104_v20  ;;  %547 = vmatpush.msrb.mxu3 %v1085_v17 }
  0x40   : > { %482 = vmatpush.msrb.mxu1 %v1061_v13  ;;  %528 = vmatpush.msrb.mxu2 %v1072_v15 }
  0x41   : > { %464 = vmatpush.msrb.mxu0 %v1123_v23  ;;  %548 = vmatpush.msrb.mxu3 %v1104_v20 }
  0x42   : > { %483 = vmatpush.msrb.mxu1 %v1080_v16  ;;  %529 = vmatpush.msrb.mxu2 %v1091_v18 }
  0x43   : > { %465 = vmatpush.msrb.mxu0 %v1142_v26  ;;  %549 = vmatpush.msrb.mxu3 %v1123_v23 }
  0x44   : > { %484 = vmatpush.msrb.mxu1 %v1099_v19  ;;  %530 = vmatpush.msrb.mxu2 %v1110_v21 }
  0x45   : > { %466 = vmatpush.msrb.mxu0 %v1161_v29  ;;  %550 = vmatpush.msrb.mxu3 %v1142_v26 }
  0x46   : > { %485 = vmatpush.msrb.mxu1 %v1118_v22  ;;  %531 = vmatpush.msrb.mxu2 %v1129_v24 }
  0x47   : > { %467 = vmatpush.msrb.mxu0 %v1180_v32  ;;  %551 = vmatpush.msrb.mxu3 %v1161_v29 }
  0x48   : > { %486 = vmatpush.msrb.mxu1 %v1137_v25  ;;  %532 = vmatpush.msrb.mxu2 %v1148_v27 }
  0x49   : > { %468 = vmatpush.msrb.mxu0 %v1199_v35  ;;  %552 = vmatpush.msrb.mxu3 %v1180_v32 }
  0x4a   : > { %487 = vmatpush.msrb.mxu1 %v1156_v28  ;;  %533 = vmatpush.msrb.mxu2 %v1167_v30 }
  0x4b   : > { %469 = vmatpush.msrb.mxu0 %v1218_v38  ;;  %553 = vmatpush.msrb.mxu3 %v1199_v35 }
  0x4c   : > { %488 = vmatpush.msrb.mxu1 %v1175_v31  ;;  %534 = vmatpush.msrb.mxu2 %v1186_v33 }
  0x4d   : > { %470 = vmatpush.msrb.mxu0 %v1237_v41  ;;  %554 = vmatpush.msrb.mxu3 %v1218_v38 }
  0x4e   : > { %489 = vmatpush.msrb.mxu1 %v1194_v34  ;;  %535 = vmatpush.msrb.mxu2 %v1205_v36 }
  0x4f   : > { %471 = vmatpush.msrb.mxu0 %v1256_v44  ;;  %555 = vmatpush.msrb.mxu3 %v1237_v41 }
  0x50   : > { %490 = vmatpush.msrb.mxu1 %v1213_v37  ;;  %536 = vmatpush.msrb.mxu2 %v1224_v39 }
  0x51   : > { %472 = vmatpush.msrb.mxu0 %v1280_v48  ;;  %556 = vmatpush.msrb.mxu3 %v1256_v44 }
  0x52   : > { %491 = vmatpush.msrb.mxu1 %v1232_v40  ;;  %537 = vmatpush.msrb.mxu2 %v1243_v42 }
  0x53   : > { %473 = vmatpush.msrb.mxu0 %v1289_v49  ;;  %557 = vmatpush.msrb.mxu3 %v1280_v48 }
  0x54   : > { %492 = vmatpush.msrb.mxu1 %v1251_v43  ;;  %538 = vmatpush.msrb.mxu2 %v1262_v45 }
  0x55   : > { %563 = vmatpush.msra.mxu0 %v1000_v3  ;;  %558 = vmatpush.msrb.mxu3 %v1289_v49 }
  0x56   : > { %493 = vmatpush.msrb.mxu1 %v1272_v47  ;;  %628 = vmatpush.msra.mxu2 %v1023_v7 }
  0x57   : > { %564 = vmatpush.msra.mxu0 %v1012_v5 }
  0x58   : > { %608 = vmatpush.msra.mxu1 %v989_v1  ;;  %629 = vmatpush.msra.mxu2 %v1036_v9 }
  0x59   : > { %565 = vmatpush.msra.mxu0 %v1018_v6 }
  0x5a   : > { %609 = vmatpush.msra.mxu1 %v994_v2  ;;  %630 = vmatpush.msra.mxu2 %v1047_v11 }
  0x5b   : > { %566 = vmatpush.msra.mxu0 %v1042_v10 }
  0x5c   : > { %610 = vmatpush.msra.mxu1 %v1006_v4  ;;  %631 = vmatpush.msra.mxu2 %v1066_v14 }
  0x5d   : > { %567 = vmatpush.msra.mxu0 %v1061_v13 }
  0x5e   : > { %611 = vmatpush.msra.mxu1 %v1029_v8  ;;  %632 = vmatpush.msra.mxu2 %v1085_v17 }
  0x5f   : > { %568 = vmatpush.msra.mxu0 %v1080_v16 }
  0x60   : > { %612 = vmatpush.msra.mxu1 %v1053_v12  ;;  %633 = vmatpush.msra.mxu2 %v1104_v20 }
  0x61   : > { %569 = vmatpush.msra.mxu0 %v1099_v19 }
  0x62   : > { %613 = vmatpush.msra.mxu1 %v1072_v15  ;;  %634 = vmatpush.msra.mxu2 %v1123_v23  ;;  %v835_v23 = vld [vmem:[%s980_s30 + $0x14] sm:$0xf] }
  0x63   : > { %570 = vmatpush.msra.mxu0 %v1118_v22 }
  0x64   : > { %614 = vmatpush.msra.mxu1 %v1091_v18  ;;  %635 = vmatpush.msra.mxu2 %v1142_v26 }
  0x65   : > { %571 = vmatpush.msra.mxu0 %v1137_v25 }
  0x66   : > { %615 = vmatpush.msra.mxu1 %v1110_v21  ;;  %636 = vmatpush.msra.mxu2 %v1161_v29 }
  0x67   : > { %572 = vmatpush.msra.mxu0 %v1156_v28 }
  0x68   : > { %616 = vmatpush.msra.mxu1 %v1129_v24  ;;  %637 = vmatpush.msra.mxu2 %v1180_v32 }
  0x69   : > { %573 = vmatpush.msra.mxu0 %v1175_v31 }
  0x6a   : > { %617 = vmatpush.msra.mxu1 %v1148_v27  ;;  %638 = vmatpush.msra.mxu2 %v1199_v35 }
  0x6b   : > { %574 = vmatpush.msra.mxu0 %v1194_v34 }
  0x6c   : > { %618 = vmatpush.msra.mxu1 %v1167_v30  ;;  %639 = vmatpush.msra.mxu2 %v1218_v38 }
  0x6d   : > { %575 = vmatpush.msra.mxu0 %v1213_v37 }
  0x6e   : > { %619 = vmatpush.msra.mxu1 %v1186_v33  ;;  %640 = vmatpush.msra.mxu2 %v1237_v41  ;;  %v837_v33 = vld [vmem:[%s980_s30 + $0x18] sm:$0xff] }
  0x6f   : > { %576 = vmatpush.msra.mxu0 %v1232_v40 }
  0x70   : > { %620 = vmatpush.msra.mxu1 %v1205_v36  ;;  %641 = vmatpush.msra.mxu2 %v1256_v44  ;;  %v589_v36 = vrot.slane %v837_v33, 4 }
  0x71   : > { %577 = vmatpush.msra.mxu0 %v1251_v43 }
  0x72   : > { %621 = vmatpush.msra.mxu1 %v1224_v39  ;;  %642 = vmatpush.msra.mxu2 %v1280_v48 }
  0x73   : > { %578 = vmatpush.msra.mxu0 %v1272_v47 }
  0x74   : > { %622 = vmatpush.msra.mxu1 %v1243_v42  ;;  %643 = vmatpush.msra.mxu2 %v1289_v49 }
  0x76   : > { %623 = vmatpush.msra.mxu1 %v1262_v45 }
  0xb0   : > { %v371_v51 = vpop.f32.mrf.mxu0 }
  0xb1   : > { %v414_v52 = vadd.f32 %v371_v51, %v352_v50 }
  0xb3   : > { %v415_v54 = vmul.f32 0.5, %v414_v52 }
  0xb4   : > { %v391_v55 = vpop.f32.mrf.mxu1 }
  0xb5   : > { %873 = vtanh.f32 %v415_v54  ;;  %v422_v56 = vadd.f32 %v420_v53, %v391_v55 }
  0xb7   : > { %v423_v57 = vmul.f32 0.5, %v422_v56  ;;  %v411_v59 = vpop.f32.mrf.mxu2  ;;  %v840_v56 = vld [vmem:[%s980_s30 + $0x24] sm:$0xff] }
  0xb8   : > { %v427_v62 = vadd.f32 %v1411_v58, %v411_v59 }
  0xb9   : > { %875 = vtanh.f32 %v423_v57 }
  0xbb   : > { %v874_v60 = vpop.eup %873 }
  0xbc   : > { %v417_v61 = vadd.f32 1.0, %v874_v60 }
  0xbe   : > { %v418_v63 = vmul.f32 0.5, %v417_v61  ;;  %v674_v61 = vrot.slane %v840_v56, 4 }
  0xbf   : > { %v876_v2 = vpop.eup %875 }
  0xc0   : > { %v428_v1 = vmul.f32 %v427_v62, %v418_v63  ;;  %v425_v7 = vadd.f32 1.0, %v876_v2 }
  0xc2   : > { %v429_v4 = vadd.f32 %v428_v1, %v353_v0  ;;  %v426_v8 = vmul.f32 0.5, %v425_v7 }
  0xc4   : > { %877 = vtanh.f32 %v429_v4 }
  0xca   : > { %v878_v9 = vpop.eup %877 }
  0xcb   : > { %v431_v11 = vsub.f32 %v1267_v46, %v878_v9  ;;  %v838_v46 = vld [vmem:[%s980_s30 + $0x20] sm:$0xf] }
  0xcd   : > { %v432_v12 = vmul.f32 %v431_v11, %v426_v8 }
  0xcf   : > { %v433_v14 = vadd.f32 %v878_v9, %v432_v12  ;;  %v841_v9 = vld [vmem:[%s980_s30 + $0x2c] sm:$0xf] }
  0xd1   : > { %454 = vmatmul.f32.vlgmr.msra.gmra.mxu3 %v433_v14  ;;  %434 = vst [vmem:[%s975_s27] sm:$0xf] %v433_v14  ;;  %474 = vmatmul.f32.vlgmr.msrb.gmra.mxu0 %v433_v14 }
  0xd2   : > { %494 = vmatmul.f32.vlgmr.msrb.gmra.mxu1 %v433_v14  ;;  %648 = vmatpush.msra.mxu3 %v1000_v3  ;;  %v834_v3 = vld [vmem:[%s980_s30 + $0xc] sm:$0xff] }
  0xd4   : > { %649 = vmatpush.msra.mxu3 %v1012_v5 }
  0xd6   : > { %650 = vmatpush.msra.mxu3 %v1018_v6 }
  0xd8   : > { %651 = vmatpush.msra.mxu3 %v1042_v10  ;;  %v504_v10 = vrot.slane %v834_v3, 4 }
  0xda   : > { %652 = vmatpush.msra.mxu3 %v1061_v13 }
  0xdc   : > { %653 = vmatpush.msra.mxu3 %v1080_v16 }
  0xde   : > { %654 = vmatpush.msra.mxu3 %v1099_v19 }
  0xe0   : > { %655 = vmatpush.msra.mxu3 %v1118_v22 }
  0xe2   : > { %656 = vmatpush.msra.mxu3 %v1137_v25 }
  0xe4   : > { %657 = vmatpush.msra.mxu3 %v1156_v28 }
  0xe6   : > { %658 = vmatpush.msra.mxu3 %v1175_v31 }
  0xe8   : > { %659 = vmatpush.msra.mxu3 %v1194_v34 }
  0xea   : > { %660 = vmatpush.msra.mxu3 %v1213_v37 }
  0xec   : > { %661 = vmatpush.msra.mxu3 %v1232_v40 }
  0xee   : > { %662 = vmatpush.msra.mxu3 %v1251_v43 }
  0xf0   : > { %663 = vmatpush.msra.mxu3 %v1272_v47 }
 0x14e   : > { %v475_v13 = vpop.f32.mrf.mxu0 }
 0x14f   : > { %v506_v16 = vadd.f32 %v504_v10, %v475_v13  ;;  %v495_v19 = vpop.f32.mrf.mxu1 }
 0x150   : > { %v511_v21 = vadd.f32 %v1411_v58, %v495_v19 }
 0x151   : > { %v507_v17 = vmul.f32 0.5, %v506_v16 }
 0x154   : > { %v455_v5 = vpop.f32.mrf.mxu3 }
 0x155   : > { %v498_v6 = vadd.f32 %v834_v3, %v455_v5 }
 0x157   : > { %v499_v15 = vmul.f32 0.5, %v498_v6 }
 0x159   : > { %879 = vtanh.f32 %v499_v15 }
 0x15a   : > { %881 = vtanh.f32 %v507_v17 }
 0x15f   : > { %v880_v18 = vpop.eup %879 }
 0x160   : > { %v501_v20 = vadd.f32 1.0, %v880_v18  ;;  %v882_v26 = vpop.eup %881 }
 0x161   : > { %v509_v27 = vadd.f32 1.0, %v882_v26 }
 0x162   : > { %v502_v22 = vmul.f32 0.5, %v501_v20 }
 0x163   : > { %v510_v29 = vmul.f32 0.5, %v509_v27 }
 0x164   : > { %v512_v24 = vmul.f32 %v511_v21, %v502_v22 }
 0x166   : > { %v513_v25 = vadd.f32 %v835_v23, %v512_v24 }
 0x168   : > { %883 = vtanh.f32 %v513_v25 }
 0x16e   : > { %v884_v28 = vpop.eup %883 }
 0x16f   : > { %v515_v30 = vsub.f32 %v433_v14, %v884_v28 }
 0x171   : > { %v516_v31 = vmul.f32 %v515_v30, %v510_v29 }
 0x173   : > { %v517_v32 = vadd.f32 %v884_v28, %v516_v31 }
 0x175   : > { %539 = vmatmul.f32.vlgmr.msrb.gmra.mxu2 %v517_v32  ;;  %836 = vst [vmem:[%s975_s27 + $0x4] sm:$0xf] %v517_v32  ;;  %559 = vmatmul.f32.vlgmr.msrb.gmra.mxu3 %v517_v32 }
 0x176   : > { %579 = vmatmul.f32.vlgmr.msra.gmra.mxu0 %v517_v32 }
 0x1f3   : > { %v580_v42 = vpop.f32.mrf.mxu0 }
 0x1f4   : > { %v596_v44 = vadd.f32 %v1411_v58, %v580_v42 }
 0x1f8   : > { %v540_v34 = vpop.f32.mrf.mxu2  ;;  %v560_v38 = vpop.f32.mrf.mxu3 }
 0x1f9   : > { %v583_v35 = vadd.f32 %v837_v33, %v540_v34  ;;  %v591_v39 = vadd.f32 %v589_v36, %v560_v38 }
 0x1fb   : > { %v584_v37 = vmul.f32 0.5, %v583_v35  ;;  %v592_v40 = vmul.f32 0.5, %v591_v39 }
 0x1fd   : > { %885 = vtanh.f32 %v584_v37 }
 0x1fe   : > { %887 = vtanh.f32 %v592_v40 }
 0x203   : > { %v886_v41 = vpop.eup %885 }
 0x204   : > { %v586_v43 = vadd.f32 1.0, %v886_v41  ;;  %v888_v49 = vpop.eup %887 }
 0x205   : > { %v594_v50 = vadd.f32 1.0, %v888_v49 }
 0x206   : > { %v587_v45 = vmul.f32 0.5, %v586_v43 }
 0x207   : > { %v595_v52 = vmul.f32 0.5, %v594_v50 }
 0x208   : > { %v597_v47 = vmul.f32 %v596_v44, %v587_v45 }
 0x20a   : > { %v598_v48 = vadd.f32 %v838_v46, %v597_v47 }
 0x20c   : > { %889 = vtanh.f32 %v598_v48 }
 0x212   : > { %v890_v51 = vpop.eup %889 }
 0x213   : > { %v600_v53 = vsub.f32 %v517_v32, %v890_v51 }
 0x215   : > { %v601_v54 = vmul.f32 %v600_v53, %v595_v52 }
 0x217   : > { %v602_v55 = vadd.f32 %v890_v51, %v601_v54 }
 0x219   : > { %839 = vst [vmem:[%s975_s27 + $0x8] sm:$0xf] %v602_v55  ;;  %624 = vmatmul.f32.vlgmr.msra.gmra.mxu1 %v602_v55  ;;  %644 = vmatmul.f32.vlgmr.msra.gmra.mxu2 %v602_v55 }
 0x21a   : > { %664 = vmatmul.f32.vlgmr.msra.gmra.mxu3 %v602_v55 }
 0x296   : > { %v625_v57 = vpop.f32.mrf.mxu1 }
 0x297   : > { %v668_v59 = vadd.f32 %v840_v56, %v625_v57 }
 0x299   : > { %v669_v60 = vmul.f32 0.5, %v668_v59 }
 0x29b   : > { %891 = vtanh.f32 %v669_v60 }
 0x29c   : > { %v645_v62 = vpop.f32.mrf.mxu2 }
 0x29d   : > { %v676_v63 = vadd.f32 %v674_v61, %v645_v62  ;;  %v665_v2 = vpop.f32.mrf.mxu3 }
 0x29e   : > { %v681_v8 = vadd.f32 %v1411_v58, %v665_v2 }
 0x29f   : > { %v677_v0 = vmul.f32 0.5, %v676_v63 }
 0x2a1   : > { %v892_v1 = vpop.eup %891  ;;  %893 = vtanh.f32 %v677_v0 }
 0x2a2   : > { %v671_v4 = vadd.f32 1.0, %v892_v1 }
 0x2a4   : > { %v672_v7 = vmul.f32 0.5, %v671_v4 }
 0x2a6   : > { %v682_v11 = vmul.f32 %v681_v8, %v672_v7 }
 0x2a7   : > { %v894_v14 = vpop.eup %893 }
 0x2a8   : > { %v683_v12 = vadd.f32 %v841_v9, %v682_v11  ;;  %v679_v3 = vadd.f32 1.0, %v894_v14 }
 0x2aa   : > { %895 = vtanh.f32 %v683_v12  ;;  %v680_v6 = vmul.f32 0.5, %v679_v3 }
 0x2b0   : > { %v896_v5 = vpop.eup %895 }
 0x2b1   : > { %v685_v10 = vsub.f32 %v602_v55, %v896_v5 }
 0x2b3   : > { %v686_v13 = vmul.f32 %v685_v10, %v680_v6 }
 0x2b4   : > { %694 = sbr.rel (%p843_p6) target bundleno = 698 (0x2ba), region = 44 }
 0x2b5   : > { %v687_v15 = vadd.f32 %v896_v5, %v686_v13 }
 0x2b7   : > { %842 = vst [vmem:[%s975_s27 + $0xc] sm:$0xf] %v687_v15 }
 0x2b8   : > { %690 = vst [vmem:[#allocation2] sm:$0xf] %v687_v15 }
 0x2b9   : > { %695 = vst [vmem:[%s1463_s5] sm:$0xf] %v687_v15 }
 0x2ba PF: > { %s16_s20 = sadd.s32 1, %s919_s20   ;;  %s1464_s18 = smov %s915_s19 }
 0x2bb   : > { %p13_p7 = scmp.ge.s32.totalorder %s16_s20, 4   ;;  %s1465_s19 = smov %s1467_s21 }
 0x2bd   :  { %15 = sbr.rel (!%p13_p7) target bundleno = 2 (0x2), region = 95 }

</bundles_post_ra>
